<compile_context>
chip_gen: v6e
topology: v6e:2x2x1
jax: 0.10.0
libtpu: 0.0.40
codegen_flags: <defaults>
</compile_context>

<pallas_src>
import numpy as np
import jax
import jax.numpy as jnp
from jax.experimental import pallas as pl
from jax.experimental.pallas import tpu as pltpu

HIDDEN_SIZES = [1024, 512, 256, 128, 64]   # module default hidden_sizes
BN_EPS = 1e-5


def _round_up(x, m):
    return (x + m - 1) // m * m


# ----------------------------------------------------------------------------
# Kernel
# ----------------------------------------------------------------------------
def _make_kernel(hidden_sizes, bias_offs, wout_off, bout_off):
    """Build the fused MLP kernel; sizes/offsets are baked in as static constants."""
    n_hidden = len(hidden_sizes)

    def kernel(x_ref, *refs):
        # refs = (W_1..W_n [bf16], vec [packed f32 biases + w_out row + b_out], out)
        vec_ref = refs[n_hidden]
        o_ref = refs[n_hidden + 1]

        h = x_ref[...].astype(jnp.float32)
        for i in range(n_hidden):
            w = refs[i][...]                                  # (prev, h_i) bf16
            off, hsz = bias_offs[i], hidden_sizes[i]
            b = vec_ref[:, off:off + hsz]                     # (1, h_i) f32
            # MXU: bf16 x bf16 -> f32 accumulate. BN(eval) already folded into W/b.
            z = jnp.dot(h.astype(jnp.bfloat16), w,
                        preferred_element_type=jnp.float32) + b
            h = jnp.maximum(z, 0.0)                           # ReLU in f32 (VPU)
        # TODO(synk): Dropout layers are identity in eval mode; no kernel op emitted.

        # Final (prev -> 1) layer as VPU multiply + cross-lane reduction
        # (avoids a lane-padded N=1 MXU matmul and masked lane-1 result stores).
        d_last = hidden_sizes[-1]
        w_row = vec_ref[:, wout_off:wout_off + d_last]        # (1, d_last) f32
        b_out = vec_ref[:, bout_off:bout_off + 1]             # (1, 1) f32
        o_ref[...] = jnp.sum(h * w_row, axis=-1, keepdims=True) + b_out

    return kernel


# ----------------------------------------------------------------------------
# Parameters
# ----------------------------------------------------------------------------
def init_raw_params(key, input_size, hidden_sizes=HIDDEN_SIZES):
    """PyTorch-like Linear init + randomized eval-mode BatchNorm statistics.

    Returns (layers, w_out, b_out); each layer is
    (W [in,out], b [out], gamma, beta, running_mean, running_var).
    """
    layers = []
    prev = input_size
    for h in hidden_sizes:
        key, k1, k2, k3, k4, k5, k6 = jax.random.split(key, 7)
        bound = 1.0 / np.sqrt(prev)
        w = jax.random.uniform(k1, (prev, h), jnp.float32, -bound, bound)
        b = jax.random.uniform(k2, (h,), jnp.float32, -bound, bound)
        gamma = jax.random.uniform(k3, (h,), jnp.float32, 0.5, 1.5)
        beta = jax.random.normal(k4, (h,), jnp.float32) * 0.1
        mean = jax.random.normal(k5, (h,), jnp.float32) * 0.1
        var = jax.random.uniform(k6, (h,), jnp.float32, 0.5, 1.5)
        layers.append((w, b, gamma, beta, mean, var))
        prev = h
    key, k1, k2 = jax.random.split(key, 3)
    bound = 1.0 / np.sqrt(prev)
    w_out = jax.random.uniform(k1, (prev,), jnp.float32, -bound, bound)
    b_out = jax.random.uniform(k2, (), jnp.float32, -bound, bound)
    return layers, w_out, b_out


def fold_and_pack(layers, w_out, b_out):
    """Fold eval-mode BN into each Linear, quantize weights to bf16, and pack all
    small per-layer vectors into a single lane-aligned (1, N) f32 buffer."""
    weights, biases = [], []
    for (w, b, gamma, beta, mean, var) in layers:
        scale = gamma / jnp.sqrt(var + BN_EPS)
        shift = beta - mean * scale
        weights.append((w * scale[None, :]).astype(jnp.bfloat16))
        biases.append(b * scale + shift)

    segs, bias_offs, off = [], [], 0
    for b in biases:                                   # each segment 128-aligned
        bias_offs.append(off)
        pad_w = _round_up(b.shape[0], 128)
        segs.append(jnp.pad(b, (0, pad_w - b.shape[0])))
        off += pad_w
    wout_off = off
    pad_w = _round_up(w_out.shape[0], 128)
    segs.append(jnp.pad(w_out, (0, pad_w - w_out.shape[0])))
    off += pad_w
    bout_off = off
    segs.append(jnp.pad(jnp.reshape(b_out, (1,)), (0, 127)))
    off += 128
    vec = jnp.concatenate(segs).reshape(1, off)

    return dict(weights=weights, biases=biases, w_out=w_out, b_out=b_out,
                vec=vec, bias_offs=tuple(bias_offs),
                wout_off=wout_off, bout_off=bout_off)


# ----------------------------------------------------------------------------
# Wrapper
# ----------------------------------------------------------------------------
def ultra_deep_net_v4_forward(x, packed, tile_b=256):
    """Run the fused Pallas kernel. x: [batch, input_size] f32."""
    batch, in_dim = x.shape
    weights, vec = packed['weights'], packed['vec']
    hidden_sizes = tuple(int(w.shape[1]) for w in weights)

    tb = min(int(tile_b), _round_up(batch, 8))
    tb = max(8, (tb // 8) * 8)                 # batch tile, multiple of 8 sublanes
    padded = _round_up(batch, tb)
    if padded != batch:
        x = jnp.pad(x, ((0, padded - batch), (0, 0)))

    kernel = _make_kernel(hidden_sizes, packed['bias_offs'],
                          packed['wout_off'], packed['bout_off'])

    in_specs = [pl.BlockSpec((tb, in_dim), lambda i: (i, 0))]        # x: batch-tiled
    in_specs += [pl.BlockSpec(tuple(w.shape), lambda i: (0, 0))      # weights resident
                 for w in weights]
    in_specs += [pl.BlockSpec(tuple(vec.shape), lambda i: (0, 0))]   # packed vectors

    out = pl.pallas_call(
        kernel,
        out_shape=jax.ShapeDtypeStruct((padded, 1), jnp.float32),
        grid=(padded // tb,),
        in_specs=in_specs,
        out_specs=pl.BlockSpec((tb, 1), lambda i: (i, 0)),
        compiler_params=pltpu.CompilerParams(
            dimension_semantics=("parallel",)),   # v7x: split batch tiles across TCs
    )(x, *weights, vec)
    return jnp.squeeze(out[:batch])               # matches torch .squeeze()


# ----------------------------------------------------------------------------
# Pure-JAX references
# ----------------------------------------------------------------------------
def reference_forward(x, layers, w_out, b_out):
    """Exact f32 reference: original (unfolded) Linear + BatchNorm(eval) + ReLU."""
    h = x
    for (w, b, gamma, beta, mean, var) in layers:
        z = jnp.dot(h, w, precision=jax.lax.Precision.HIGHEST) + b
        z = (z - mean) * (gamma / jnp.sqrt(var + BN_EPS)) + beta
        h = jnp.maximum(z, 0.0)
    y = jnp.dot(h, w_out, precision=jax.lax.Precision.HIGHEST) + b_out
    return jnp.squeeze(y)


def reference_forward_folded(x, packed):
    """Reference with the same folded / bf16-quantized params the kernel uses."""
    h = x
    for w_bf16, b in zip(packed['weights'], packed['biases']):
        z = jnp.dot(h.astype(jnp.bfloat16), w_bf16,
                    preferred_element_type=jnp.float32) + b
        h = jnp.maximum(z, 0.0)
    y = jnp.sum(h * packed['w_out'][None, :], axis=-1) + packed['b_out']
    return jnp.squeeze(y)


if __name__ == "__main__":
    key = jax.random.PRNGKey(0)
    k_params, k_x = jax.random.split(key)

    input_size = 64
    batch = 16

    layers, w_out, b_out = init_raw_params(k_params, input_size)
    packed = fold_and_pack(layers, w_out, b_out)
    x = jax.random.normal(k_x, (batch, input_size), jnp.float32)

    # tile_b=8 -> grid of 2 batch tiles (exercises the batch grid / parallel axis).
    y = jax.block_until_ready(ultra_deep_net_v4_forward(x, packed, tile_b=8))
    assert y.shape == (batch,), f"unexpected output shape {y.shape}"

    # Tight check vs. a reference using the same folded bf16 parameters
    # (validates the Pallas lowering; only accumulation-order differences remain).
    y_folded = jax.block_until_ready(reference_forward_folded(x, packed))
    np.testing.assert_allclose(np.asarray(y), np.asarray(y_folded),
                               rtol=5e-3, atol=5e-3)

    # Loose check vs. the exact f32 module math (unfolded BN); the difference is
    # dominated by the intentional bf16 weight quantization.
    y_exact = jax.block_until_ready(reference_forward(x, layers, w_out, b_out))
    np.testing.assert_allclose(np.asarray(y), np.asarray(y_exact),
                               rtol=1e-1, atol=1e-1)

    print("KERNEL_OK")
</pallas_src>

<mosaic_0001>
module attributes {stable_mosaic.version = 11 : i64} {
  func.func @kernel(%arg0: i32, %arg1: memref<8x64xf32, #tpu.memory_space<vmem>>, %arg2: memref<64x1024xbf16, #tpu.memory_space<vmem>>, %arg3: memref<1024x512xbf16, #tpu.memory_space<vmem>>, %arg4: memref<512x256xbf16, #tpu.memory_space<vmem>>, %arg5: memref<256x128xbf16, #tpu.memory_space<vmem>>, %arg6: memref<128x64xbf16, #tpu.memory_space<vmem>>, %arg7: memref<1x2304xf32, #tpu.memory_space<vmem>>, %arg8: memref<8x1xf32, #tpu.memory_space<vmem>>) attributes {dimension_semantics = [#tpu.dimension_semantics<parallel>], iteration_bounds = array<i64: 2>, scalar_prefetch = 0 : i64, scratch_operands = 0 : i64, tpu.core_type = #tpu.core_type<tc>, window_params = [{transform_indices = @transform_0, window_bounds = array<i64: 8, 64>}, {pipeline_mode = #tpu.pipeline_mode<synchronous>, transform_indices = @transform_1, window_bounds = array<i64: 64, 1024>}, {pipeline_mode = #tpu.pipeline_mode<synchronous>, transform_indices = @transform_2, window_bounds = array<i64: 1024, 512>}, {pipeline_mode = #tpu.pipeline_mode<synchronous>, transform_indices = @transform_3, window_bounds = array<i64: 512, 256>}, {pipeline_mode = #tpu.pipeline_mode<synchronous>, transform_indices = @transform_4, window_bounds = array<i64: 256, 128>}, {pipeline_mode = #tpu.pipeline_mode<synchronous>, transform_indices = @transform_5, window_bounds = array<i64: 128, 64>}, {pipeline_mode = #tpu.pipeline_mode<synchronous>, transform_indices = @transform_6, window_bounds = array<i64: 1, 2304>}, {transform_indices = @transform_7, window_bounds = array<i64: 8, 1>}]} {
    %c0 = arith.constant 0 : index
    %c0_0 = arith.constant 0 : index
    %0 = vector.load %arg1[%c0, %c0_0] : memref<8x64xf32, #tpu.memory_space<vmem>>, vector<8x64xf32>
    %c0_1 = arith.constant 0 : index
    %c0_2 = arith.constant 0 : index
    %1 = vector.load %arg2[%c0_1, %c0_2] : memref<64x1024xbf16, #tpu.memory_space<vmem>>, vector<64x1024xbf16>
    %c0_3 = arith.constant 0 : index
    %c0_4 = arith.constant 0 : index
    %2 = vector.load %arg7[%c0_3, %c0_4] : memref<1x2304xf32, #tpu.memory_space<vmem>>, vector<1x1024xf32>
    %3 = arith.truncf %0 : vector<8x64xf32> to vector<8x64xbf16>
    %cst = arith.constant dense<0.000000e+00> : vector<8x1024xf32>
    %4 = tpu.matmul %3, %1, %cst {dimension_numbers = #tpu.dot_dimension_numbers<[1], [0], [0], [1], [0, 0, 1, 1], [], []>} : vector<8x64xbf16>, vector<64x1024xbf16>, vector<8x1024xf32> -> vector<8x1024xf32>
    %5 = vector.broadcast %2 : vector<1x1024xf32> to vector<8x1024xf32>
    %6 = arith.addf %4, %5 : vector<8x1024xf32>
    %cst_5 = arith.constant 0.000000e+00 : f32
    %7 = vector.broadcast %cst_5 : f32 to vector<8x1024xf32>
    %8 = arith.maximumf %6, %7 : vector<8x1024xf32>
    %c0_6 = arith.constant 0 : index
    %c0_7 = arith.constant 0 : index
    %9 = vector.load %arg3[%c0_6, %c0_7] : memref<1024x512xbf16, #tpu.memory_space<vmem>>, vector<1024x512xbf16>
    %c0_8 = arith.constant 0 : index
    %c1024 = arith.constant 1024 : index
    %10 = vector.load %arg7[%c0_8, %c1024] : memref<1x2304xf32, #tpu.memory_space<vmem>>, vector<1x512xf32>
    %11 = arith.truncf %8 : vector<8x1024xf32> to vector<8x1024xbf16>
    %cst_9 = arith.constant dense<0.000000e+00> : vector<8x512xf32>
    %12 = tpu.matmul %11, %9, %cst_9 {dimension_numbers = #tpu.dot_dimension_numbers<[1], [0], [0], [1], [0, 0, 1, 1], [], []>} : vector<8x1024xbf16>, vector<1024x512xbf16>, vector<8x512xf32> -> vector<8x512xf32>
    %13 = vector.broadcast %10 : vector<1x512xf32> to vector<8x512xf32>
    %14 = arith.addf %12, %13 : vector<8x512xf32>
    %cst_10 = arith.constant 0.000000e+00 : f32
    %15 = vector.broadcast %cst_10 : f32 to vector<8x512xf32>
    %16 = arith.maximumf %14, %15 : vector<8x512xf32>
    %c0_11 = arith.constant 0 : index
    %c0_12 = arith.constant 0 : index
    %17 = vector.load %arg4[%c0_11, %c0_12] : memref<512x256xbf16, #tpu.memory_space<vmem>>, vector<512x256xbf16>
    %c0_13 = arith.constant 0 : index
    %c1536 = arith.constant 1536 : index
    %18 = vector.load %arg7[%c0_13, %c1536] : memref<1x2304xf32, #tpu.memory_space<vmem>>, vector<1x256xf32>
    %19 = arith.truncf %16 : vector<8x512xf32> to vector<8x512xbf16>
    %cst_14 = arith.constant dense<0.000000e+00> : vector<8x256xf32>
    %20 = tpu.matmul %19, %17, %cst_14 {dimension_numbers = #tpu.dot_dimension_numbers<[1], [0], [0], [1], [0, 0, 1, 1], [], []>} : vector<8x512xbf16>, vector<512x256xbf16>, vector<8x256xf32> -> vector<8x256xf32>
    %21 = vector.broadcast %18 : vector<1x256xf32> to vector<8x256xf32>
    %22 = arith.addf %20, %21 : vector<8x256xf32>
    %cst_15 = arith.constant 0.000000e+00 : f32
    %23 = vector.broadcast %cst_15 : f32 to vector<8x256xf32>
    %24 = arith.maximumf %22, %23 : vector<8x256xf32>
    %c0_16 = arith.constant 0 : index
    %c0_17 = arith.constant 0 : index
    %25 = vector.load %arg5[%c0_16, %c0_17] : memref<256x128xbf16, #tpu.memory_space<vmem>>, vector<256x128xbf16>
    %c0_18 = arith.constant 0 : index
    %c1792 = arith.constant 1792 : index
    %26 = vector.load %arg7[%c0_18, %c1792] : memref<1x2304xf32, #tpu.memory_space<vmem>>, vector<1x128xf32>
    %27 = arith.truncf %24 : vector<8x256xf32> to vector<8x256xbf16>
    %cst_19 = arith.constant dense<0.000000e+00> : vector<8x128xf32>
    %28 = tpu.matmul %27, %25, %cst_19 {dimension_numbers = #tpu.dot_dimension_numbers<[1], [0], [0], [1], [0, 0, 1, 1], [], []>} : vector<8x256xbf16>, vector<256x128xbf16>, vector<8x128xf32> -> vector<8x128xf32>
    %29 = vector.broadcast %26 : vector<1x128xf32> to vector<8x128xf32>
    %30 = arith.addf %28, %29 : vector<8x128xf32>
    %cst_20 = arith.constant 0.000000e+00 : f32
    %31 = vector.broadcast %cst_20 : f32 to vector<8x128xf32>
    %32 = arith.maximumf %30, %31 : vector<8x128xf32>
    %c0_21 = arith.constant 0 : index
    %c0_22 = arith.constant 0 : index
    %33 = vector.load %arg6[%c0_21, %c0_22] : memref<128x64xbf16, #tpu.memory_space<vmem>>, vector<128x64xbf16>
    %c0_23 = arith.constant 0 : index
    %c1920 = arith.constant 1920 : index
    %34 = vector.load %arg7[%c0_23, %c1920] : memref<1x2304xf32, #tpu.memory_space<vmem>>, vector<1x64xf32>
    %35 = arith.truncf %32 : vector<8x128xf32> to vector<8x128xbf16>
    %cst_24 = arith.constant dense<0.000000e+00> : vector<8x64xf32>
    %36 = tpu.matmul %35, %33, %cst_24 {dimension_numbers = #tpu.dot_dimension_numbers<[1], [0], [0], [1], [0, 0, 1, 1], [], []>} : vector<8x128xbf16>, vector<128x64xbf16>, vector<8x64xf32> -> vector<8x64xf32>
    %37 = vector.broadcast %34 : vector<1x64xf32> to vector<8x64xf32>
    %38 = arith.addf %36, %37 : vector<8x64xf32>
    %cst_25 = arith.constant 0.000000e+00 : f32
    %39 = vector.broadcast %cst_25 : f32 to vector<8x64xf32>
    %40 = arith.maximumf %38, %39 : vector<8x64xf32>
    %c0_26 = arith.constant 0 : index
    %c2048 = arith.constant 2048 : index
    %41 = vector.load %arg7[%c0_26, %c2048] : memref<1x2304xf32, #tpu.memory_space<vmem>>, vector<1x64xf32>
    %c0_27 = arith.constant 0 : index
    %c2176 = arith.constant 2176 : index
    %42 = vector.load %arg7[%c0_27, %c2176] : memref<1x2304xf32, #tpu.memory_space<vmem>>, vector<1x1xf32>
    %43 = vector.broadcast %41 : vector<1x64xf32> to vector<8x64xf32>
    %44 = arith.mulf %40, %43 : vector<8x64xf32>
    %cst_28 = arith.constant dense<0.000000e+00> : vector<8xf32>
    %45 = vector.multi_reduction <add>, %44, %cst_28 [1] : vector<8x64xf32> to vector<8xf32>
    %46 = vector.shape_cast %45 : vector<8xf32> to vector<8x1xf32>
    %47 = vector.broadcast %42 : vector<1x1xf32> to vector<8x1xf32>
    %48 = arith.addf %46, %47 : vector<8x1xf32>
    %c0_29 = arith.constant 0 : index
    %c0_30 = arith.constant 0 : index
    %49 = vector.load %arg8[%c0_29, %c0_30] : memref<8x1xf32, #tpu.memory_space<vmem>>, vector<8x1xf32>
    tpu.vector_store %arg8[%c0_29, %c0_30], %48 {strides = array<i32>} : memref<8x1xf32, #tpu.memory_space<vmem>>, vector<8x1xf32>,
    return
  }
  func.func @transform_0(%arg0: i32) -> (i32, i32) {
    %c0_i32 = arith.constant 0 : i32
    %c0_i32_0 = arith.constant 0 : i32
    return %arg0, %c0_i32 : i32, i32
  }
  func.func @transform_1(%arg0: i32) -> (i32, i32) {
    %c0_i32 = arith.constant 0 : i32
    %c0_i32_0 = arith.constant 0 : i32
    %c0_i32_1 = arith.constant 0 : i32
    return %c0_i32, %c0_i32_0 : i32, i32
  }
  func.func @transform_2(%arg0: i32) -> (i32, i32) {
    %c0_i32 = arith.constant 0 : i32
    %c0_i32_0 = arith.constant 0 : i32
    %c0_i32_1 = arith.constant 0 : i32
    return %c0_i32, %c0_i32_0 : i32, i32
  }
  func.func @transform_3(%arg0: i32) -> (i32, i32) {
    %c0_i32 = arith.constant 0 : i32
    %c0_i32_0 = arith.constant 0 : i32
    %c0_i32_1 = arith.constant 0 : i32
    return %c0_i32, %c0_i32_0 : i32, i32
  }
  func.func @transform_4(%arg0: i32) -> (i32, i32) {
    %c0_i32 = arith.constant 0 : i32
    %c0_i32_0 = arith.constant 0 : i32
    %c0_i32_1 = arith.constant 0 : i32
    return %c0_i32, %c0_i32_0 : i32, i32
  }
  func.func @transform_5(%arg0: i32) -> (i32, i32) {
    %c0_i32 = arith.constant 0 : i32
    %c0_i32_0 = arith.constant 0 : i32
    %c0_i32_1 = arith.constant 0 : i32
    return %c0_i32, %c0_i32_0 : i32, i32
  }
  func.func @transform_6(%arg0: i32) -> (i32, i32) {
    %c0_i32 = arith.constant 0 : i32
    %c0_i32_0 = arith.constant 0 : i32
    %c0_i32_1 = arith.constant 0 : i32
    return %c0_i32, %c0_i32_0 : i32, i32
  }
  func.func @transform_7(%arg0: i32) -> (i32, i32) {
    %c0_i32 = arith.constant 0 : i32
    %c0_i32_0 = arith.constant 0 : i32
    return %arg0, %c0_i32 : i32, i32
  }
}

</mosaic_0001>

<bundles_post_ra>
// kernel: tpu_custom_call.1
= control target key start
LH: loop header
LB: loop body
LE: loop exit
PB: predicated region body
PF: predicated region fallthrough
CT: control target
= control target key end

     0   :  { %12 = vsyncpa [#allocation3], 0  ;;  %s4978_s0 = inlined_call_operand.vmem [shape: f32[16,64], index: 0, kind: input, shape index: {}]   ;;  %s4979_s1 = inlined_call_operand.hbm [shape: bf16[64,1024], index: 1, kind: input, shape index: {}]   ;;  %s4980_s2 = inlined_call_operand.hbm [shape: bf16[1024,512], index: 2, kind: input, shape index: {}]   ;;  %s4981_s3 = inlined_call_operand.hbm [shape: bf16[512,256], index: 3, kind: input, shape index: {}]   ;;  %s4982_s4 = inlined_call_operand.hbm [shape: bf16[256,128], index: 4, kind: input, shape index: {}]   ;;  %s4983_s5 = inlined_call_operand.vmem [shape: bf16[128,64], index: 5, kind: input, shape index: {}]   ;;  %s4984_s6 = inlined_call_operand.vmem [shape: f32[1,2304], index: 6, kind: input, shape index: {}]   ;;  %s4985_s7 = inlined_call_operand.vmem [shape: f32[16,1], index: 7, kind: output, shape index: {}]  }
   0x1   :  { %13 = vsyncpa [#allocation5], 0 }
   0x2   :  { %14 = vsyncpa [#allocation8], 0  ;;  %s4729_s24 = smov 0  }
   0x3 LB: > { %s4674_s25 = smov [#allocation4]   ;;  %s4735_s27 = sadd.s32 4294967295, %s4672_s24   ;;  %s4672_s24 = sphi %s4729_s24, %s20_s24  }
   0x4   : > { %s228_s26 = sshll.u32 %s4674_s25, 4  ;;  %p3536_p0 = scmp.ge.s32.totalorder %s4672_s24, 1  ;;  %s229_s26 = int_to_ptr.vmem [resolvable:$true] %s228_s26 }
   0x5   : > { %p203_p1 = scmp.lt.s32.totalorder %s4672_s24, 3  ;;  %p4015_p2 = scmp.eq.s32.totalorder %s4735_s27, 0 }
   0x6   : > { %s4675_s29 = smov [#allocation2]   ;;  %s4676_s9 = smov [#allocation6]  }
   0x7   : > { %p4740_p3 = pnand %p3536_p0, %p203_p1  ;;  %s215_s30 = sshll.u32 %s4675_s29, 4  ;;  %s4746_s30 = int_to_ptr.vmem [resolvable:$true] %s215_s30 }
   0x8   : > { %s4754_s10 = sshll.u32 %s4676_s9, 4  ;;  %s4561_s11 = scalar_lea.vmem %s229_s26, 32768  ;;  %s242_s10 = int_to_ptr.vmem [resolvable:$true] %s4754_s10 }
   0x9   : > { %p4002_p4 = pneg %p4740_p3  ;;  %p4562_p7 = scmp.ne.s32.totalorder %s229_s26, %s4561_s11 }
   0xa   : > { %p4569_p10 = scmp.lt.s32.totalorder %s229_s26, %s229_s26  ;;  %p4570_p11 = scmp.lt.s32.totalorder %s4561_s11, %s4561_s11 }
   0xb   : > { %p4750_p5 = pnand %p4015_p2, %p4002_p4 }
   0xc   : > { %p4571_p12 = por %p4570_p11, %p4569_p10 }
   0xd   : > { %p4552_p6 = pneg %p4750_p5 }
   0xf   : > { %p4564_p8 = pnand %p4562_p7, %p4552_p6 }
  0x11   : > { %p4565_p9 = pneg %p4564_p8 }
  0x13   : > { %p4572_p13 = pnand %p4571_p12, %p4565_p9 }
  0x15   : > { %4575 = shalt.err (!%p4572_p13)
}
  0x16   : > { %s4677_s12 = smov 256   ;;  %s4678_s13 = smov 16  }
  0x17   : > { %4008 = dma.hbm_to_vmem [thread:$0]  (!%p4750_p5), %s4980_s2, 32768, %s229_s26, [#allocation5], %s4677_s12, %s4677_s12, %s4678_s13  }
  0x18   : > { %s4587_s16 = scalar_lea.vmem %s4746_s30, 4096  ;;  %p4595_p7 = scmp.lt.s32.totalorder %s4746_s30, %s4746_s30 }
  0x19   : > { %p4588_p0 = scmp.ne.s32.totalorder %s4746_s30, %s4587_s16  ;;  %p4596_p8 = scmp.lt.s32.totalorder %s4587_s16, %s4587_s16 }
  0x1b   : > { %p4590_p1 = pnand %p4588_p0, %p4552_p6  ;;  %p4597_p9 = por %p4596_p8, %p4595_p7 }
  0x1d   : > { %p4591_p4 = pneg %p4590_p1 }
  0x1f   : > { %p4598_p10 = pnand %p4597_p9, %p4591_p4 }
  0x21   : > { %4601 = shalt.err (!%p4598_p10)
}
  0x22   : > { %s4679_s17 = smov 512   ;;  %s4680_s18 = smov 32  }
  0x23   : > { %4005 = dma.hbm_to_vmem [thread:$0]  (!%p4750_p5), %s4979_s1, 4096, %s4746_s30, [#allocation3], %s4679_s17, %s4679_s17, %s4680_s18  }
  0x24   : > { %s4613_s21 = scalar_lea.vmem %s242_s10, 8192  ;;  %p4621_p0 = scmp.lt.s32.totalorder %s242_s10, %s242_s10 }
  0x25   : > { %p4614_p11 = scmp.ne.s32.totalorder %s242_s10, %s4613_s21  ;;  %p4622_p1 = scmp.lt.s32.totalorder %s4613_s21, %s4613_s21 }
  0x27   : > { %p4616_p12 = pnand %p4614_p11, %p4552_p6  ;;  %p4623_p4 = por %p4622_p1, %p4621_p0 }
  0x29   : > { %p4617_p13 = pneg %p4616_p12 }
  0x2b   : > { %p4624_p7 = pnand %p4623_p4, %p4617_p13 }
  0x2d   : > { %4627 = shalt.err (!%p4624_p7)
}
  0x2e   : > { %s4681_s22 = smov 128   ;;  %s4682_s23 = smov 8  }
  0x2f   : > { %4011 = dma.hbm_to_vmem [thread:$0]  (!%p4750_p5), %s4981_s3, 8192, %s242_s10, [#allocation5], %s4681_s22, %s4681_s22, %s4682_s23  }
  0x30   : > { %s4683_s29 = smov [#allocation7]  }
  0x31   : > { %s254_s30 = sshll.u32 %s4683_s29, 4  ;;  %s255_s30 = int_to_ptr.vmem [resolvable:$true] %s254_s30 }
  0x32   : > { %s4639_s9 = scalar_lea.vmem %s255_s30, 2048  ;;  %p4647_p11 = scmp.lt.s32.totalorder %s255_s30, %s255_s30 }
  0x33   : > { %p4640_p8 = scmp.ne.s32.totalorder %s255_s30, %s4639_s9  ;;  %p4648_p12 = scmp.lt.s32.totalorder %s4639_s9, %s4639_s9 }
  0x35   : > { %p4642_p9 = pnand %p4640_p8, %p4552_p6  ;;  %p4649_p13 = por %p4648_p12, %p4647_p11 }
  0x37   : > { %p4643_p10 = pneg %p4642_p9 }
  0x39   : > { %p4650_p0 = pnand %p4649_p13, %p4643_p10 }
  0x3b   : > { %4653 = shalt.err (!%p4650_p0)
}
  0x3c   : > { %s4684_s11 = smov 64   ;;  %s4685_s12 = smov 4  }
  0x3d   : > { %4014 = dma.hbm_to_vmem [thread:$0]  (!%p4750_p5), %s4982_s4, 2048, %s255_s30, [#allocation8], %s4684_s11, %s4684_s11, %s4685_s12  }
  0x3e   : > { %283 = sbr.rel (%p4740_p3) target bundleno = 1436 (0x59c), region = 48 }
  0x43   : > { %4659 = dma.done.wait (%p4015_p2), [#allocation3], 4096  }
  0x44   : > { %4661 = vsyncadd (%p4015_p2), [#allocation3], 4294963200 }
  0x45   : > { %4663 = dma.done.wait (%p4015_p2), [#allocation5], 40960  }
  0x46   : > { %4665 = vsyncadd (%p4015_p2), [#allocation5], 4294926336 }
  0x47   : > { %4667 = dma.done.wait (%p4015_p2), [#allocation8], 2048  }
  0x48   : > { %4669 = vsyncadd (%p4015_p2), [#allocation8], 4294965248  ;;  %v4686_v0 = vmov 0   ;;  %p325_p3 = scmp.lt.s32.totalorder %s4735_s27, 1  ;;  %v359_v1 = vld [vmem:[#allocation2 + $0xc0] sm:$0xff]  ;;  %v360_v3 = vld [vmem:[#allocation2 + $0xc8] sm:$0xff] }
  0x49   : > { %606 = vmatprep.mubr.bf16.mxu0 %v4686_v0  ;;  %647 = vmatprep.mubr.bf16.mxu1 %v4686_v0  ;;  %v363_v2 = vld [vmem:[#allocation2 + $0xe0] sm:$0xff]  ;;  %v364_v5 = vld [vmem:[#allocation2 + $0xe8] sm:$0xff]  ;;  %v361_v31 = vld [vmem:[#allocation2 + $0xd0] sm:$0xff]  ;;  %vm570_vm0 = vcmask 523264   ;;  %vm4688_vm1 = vmmov 0   ;;  %vm3438_vm2 = vcmask 7168  }
  0x4a   : > { %v3574_v4 = vcombine.high %v359_v1, %v363_v2  ;;  %v3573_v6 = vcombine.low %v359_v1, %v363_v2  ;;  %v351_v7 = vld [vmem:[#allocation2 + $0x80] sm:$0xff]  ;;  %v3576_v9 = vcombine.high %v360_v3, %v364_v5  ;;  %v3575_v10 = vcombine.low %v360_v3, %v364_v5  ;;  %v352_v12 = vld [vmem:[#allocation2 + $0x88] sm:$0xff]  ;;  %s4989_s27 = smov (!%p325_p3, %s4735_s27), 1  ;;  %v365_v32 = vld [vmem:[#allocation2 + $0xf0] sm:$0xff] }
  0x4b   : > { %v355_v8 = vld [vmem:[#allocation2 + $0xa0] sm:$0xff]  ;;  %v356_v13 = vld [vmem:[#allocation2 + $0xa8] sm:$0xff]  ;;  %s3547_s28 = sshll.u32 %s4989_s27, 3  ;;  %v362_v33 = vld [vmem:[#allocation2 + $0xd8] sm:$0xff]  ;;  %v3578_v38 = vcombine.high %v361_v31, %v365_v32  ;;  %v3577_v45 = vcombine.low %v361_v31, %v365_v32 }
  0x4c   : > { %v3566_v11 = vcombine.high %v351_v7, %v355_v8  ;;  %v343_v14 = vld [vmem:[#allocation2 + $0x40] sm:$0xff]  ;;  %582 = vmatprep.subr.bf16.mxu0 %v3574_v4  ;;  %v3568_v15 = vcombine.high %v352_v12, %v356_v13  ;;  %v344_v17 = vld [vmem:[#allocation2 + $0x48] sm:$0xff]  ;;  %623 = vmatprep.subr.bf16.mxu1 %v3576_v9  ;;  %v3565_v19 = vcombine.low %v351_v7, %v355_v8  ;;  %s328_s15 = scalar_lea.vmem %s4978_s0, %s3547_s28  ;;  %v366_v34 = vld [vmem:[#allocation2 + $0xf8] sm:$0xff]  ;;  %s332_s9 = scalar_lea.vmem %s4985_s7, %s3547_s28 }
  0x4d   : > { %v347_v16 = vld [vmem:[#allocation2 + $0x60] sm:$0xff]  ;;  %v348_v18 = vld [vmem:[#allocation2 + $0x68] sm:$0xff]  ;;  %583 = vmatpush1.bf16.msra.mxu0 %v3573_v6  ;;  %624 = vmatpush1.bf16.msra.mxu1 %v3575_v10  ;;  %v3567_v20 = vcombine.low %v352_v12, %v356_v13  ;;  %v353_v39 = vld [vmem:[#allocation2 + $0x90] sm:$0xff]  ;;  %v3580_v40 = vcombine.high %v362_v33, %v366_v34  ;;  %v3579_v46 = vcombine.low %v362_v33, %v366_v34 }
  0x4e   : > { %584 = vmatprep.subr.bf16.mxu0 %v3566_v11  ;;  %v3558_v21 = vcombine.high %v343_v14, %v347_v16  ;;  %625 = vmatprep.subr.bf16.mxu1 %v3568_v15  ;;  %v3560_v22 = vcombine.high %v344_v17, %v348_v18  ;;  %v335_v23 = vld [vmem:[#allocation2] sm:$0xff]  ;;  %v336_v25 = vld [vmem:[#allocation2 + $0x8] sm:$0xff]  ;;  %v3557_v27 = vcombine.low %v343_v14, %v347_v16  ;;  %v357_v41 = vld [vmem:[#allocation2 + $0xb0] sm:$0xff] }
  0x4f   : > { %v339_v24 = vld [vmem:[#allocation2 + $0x20] sm:$0xff]  ;;  %v340_v26 = vld [vmem:[#allocation2 + $0x28] sm:$0xff]  ;;  %v3559_v28 = vcombine.low %v344_v17, %v348_v18  ;;  %v354_v42 = vld [vmem:[#allocation2 + $0x98] sm:$0xff]  ;;  %v3570_v47 = vcombine.high %v353_v39, %v357_v41  ;;  %v3569_v53 = vcombine.low %v353_v39, %v357_v41 }
  0x50   : > { %v3550_v29 = vcombine.high %v335_v23, %v339_v24  ;;  %v3552_v30 = vcombine.high %v336_v25, %v340_v26  ;;  %v3549_v35 = vcombine.low %v335_v23, %v339_v24  ;;  %v334_v36 = vld [vmem:[%s328_s15] sm:$0xff]  ;;  %v3551_v37 = vcombine.low %v336_v25, %v340_v26  ;;  %v358_v44 = vld [vmem:[#allocation2 + $0xb8] sm:$0xff]  ;;  %v345_v48 = vld [vmem:[#allocation2 + $0x50] sm:$0xff] }
  0x51   : > { %585 = vmatpush1.bf16.msra.mxu0 %v3565_v19  ;;  %626 = vmatpush1.bf16.msra.mxu1 %v3567_v20  ;;  %v368_v43 = vpack.c.bf16 %v334_v36, %v334_v36  ;;  %v3572_v49 = vcombine.high %v354_v42, %v358_v44  ;;  %v349_v50 = vld [vmem:[#allocation2 + $0x70] sm:$0xff]  ;;  %v346_v51 = vld [vmem:[#allocation2 + $0x58] sm:$0xff]  ;;  %v3571_v54 = vcombine.low %v354_v42, %v358_v44 }
  0x52   : > { %586 = vmatprep.subr.bf16.mxu0 %v3558_v21  ;;  %627 = vmatprep.subr.bf16.mxu1 %v3560_v22  ;;  %v350_v52 = vld [vmem:[#allocation2 + $0x78] sm:$0xff]  ;;  %v3562_v55 = vcombine.high %v345_v48, %v349_v50  ;;  %v337_v56 = vld [vmem:[#allocation2 + $0x10] sm:$0xff]  ;;  %v3561_v61 = vcombine.low %v345_v48, %v349_v50 }
  0x53   : > { %v3564_v57 = vcombine.high %v346_v51, %v350_v52  ;;  %v341_v58 = vld [vmem:[#allocation2 + $0x30] sm:$0xff]  ;;  %v338_v59 = vld [vmem:[#allocation2 + $0x18] sm:$0xff]  ;;  %v3563_v62 = vcombine.low %v346_v51, %v350_v52 }
  0x54   : > { %v342_v60 = vld [vmem:[#allocation2 + $0x38] sm:$0xff]  ;;  %v3554_v63 = vcombine.high %v337_v56, %v341_v58  ;;  %v3553_v2 = vcombine.low %v337_v56, %v341_v58  ;;  %v4048_v4 = vld [vmem:[#allocation4 + $0xe4] ss:$16 sps:$4 sm:$0xff]   ;;  %v4046_v6 = vld [vmem:[#allocation4 + $0xe0] ss:$16 sps:$4 sm:$0xff]  }
  0x55   : > { %587 = vmatpush1.bf16.msra.mxu0 %v3557_v27  ;;  %628 = vmatpush1.bf16.msra.mxu1 %v3559_v28  ;;  %v3556_v1 = vcombine.high %v338_v59, %v342_v60  ;;  %v3555_v3 = vcombine.low %v338_v59, %v342_v60  ;;  %v4051_v5 = vld [vmem:[#allocation4 + $0x2e4] ss:$16 sps:$4 sm:$0xff]   ;;  %v4052_v9 = vld [vmem:[#allocation4 + $0xc0] ss:$16 sps:$4 sm:$0xff]  }
  0x56   : > { %588 = vmatprep.subr.bf16.mxu0 %v3550_v29  ;;  %629 = vmatprep.subr.bf16.mxu1 %v3552_v30  ;;  %v4054_v7 = vld [vmem:[#allocation4 + $0xc4] ss:$16 sps:$4 sm:$0xff]   ;;  %v4055_v10 = vld [vmem:[#allocation4 + $0x2c0] ss:$16 sps:$4 sm:$0xff]  }
  0x57   : > { %v4057_v8 = vld [vmem:[#allocation4 + $0x2c4] ss:$16 sps:$4 sm:$0xff]   ;;  %v4058_v13 = vld [vmem:[#allocation4 + $0xa0] ss:$16 sps:$4 sm:$0xff]  }
  0x58   : > { %v4060_v11 = vld [vmem:[#allocation4 + $0xa4] ss:$16 sps:$4 sm:$0xff]   ;;  %v4061_v14 = vld [vmem:[#allocation4 + $0x2a0] ss:$16 sps:$4 sm:$0xff]  }
  0x59   : > { %589 = vmatpush1.bf16.msra.mxu0 %v3549_v35  ;;  %630 = vmatpush1.bf16.msra.mxu1 %v3551_v37  ;;  %v4063_v12 = vld [vmem:[#allocation4 + $0x2a4] ss:$16 sps:$4 sm:$0xff]   ;;  %v4064_v17 = vld [vmem:[#allocation4 + $0x80] ss:$16 sps:$4 sm:$0xff]  }
  0x5a   : > { %664 = vmatprep.subr.bf16.mxu0 %v3578_v38  ;;  %705 = vmatprep.subr.bf16.mxu1 %v3580_v40  ;;  %v4066_v15 = vld [vmem:[#allocation4 + $0x84] ss:$16 sps:$4 sm:$0xff]   ;;  %v4067_v18 = vld [vmem:[#allocation4 + $0x280] ss:$16 sps:$4 sm:$0xff]  }
  0x5b   : > { %v4069_v16 = vld [vmem:[#allocation4 + $0x284] ss:$16 sps:$4 sm:$0xff]   ;;  %v4070_v20 = vld [vmem:[#allocation4 + $0x60] ss:$16 sps:$4 sm:$0xff]  }
  0x5c   : > { %3581 = vmatmul.mubr.msk.bf16.vlgmr.msra.gmra.mxu0 %vm570_vm0, %v368_v43  ;;  %3582 = vmatmul.mubr.msk.bf16.vlgmr.msra.gmra.mxu1 %vm570_vm0, %v368_v43  ;;  %v4072_v19 = vld [vmem:[#allocation4 + $0x64] ss:$16 sps:$4 sm:$0xff]   ;;  %v4073_v22 = vld [vmem:[#allocation4 + $0x260] ss:$16 sps:$4 sm:$0xff]  }
  0x5d   : > { %665 = vmatpush1.bf16.msra.mxu0 %v3577_v45  ;;  %706 = vmatpush1.bf16.msra.mxu1 %v3579_v46  ;;  %v4075_v21 = vld [vmem:[#allocation4 + $0x264] ss:$16 sps:$4 sm:$0xff]   ;;  %v4076_v25 = vld [vmem:[#allocation4 + $0x40] ss:$16 sps:$4 sm:$0xff]  }
  0x5e   : > { %666 = vmatprep.subr.bf16.mxu0 %v3570_v47  ;;  %707 = vmatprep.subr.bf16.mxu1 %v3572_v49  ;;  %v4078_v23 = vld [vmem:[#allocation4 + $0x44] ss:$16 sps:$4 sm:$0xff]   ;;  %v4079_v26 = vld [vmem:[#allocation4 + $0x240] ss:$16 sps:$4 sm:$0xff]  }
  0x5f   : > { %688 = vmatprep.mubr.bf16.mxu0 %v4686_v0  ;;  %729 = vmatprep.mubr.bf16.mxu1 %v4686_v0  ;;  %v4049_v0 = vld [vmem:[#allocation4 + $0x2e0] ss:$16 sps:$4 sm:$0xff]   ;;  %v4081_v24 = vld [vmem:[#allocation4 + $0x244] ss:$16 sps:$4 sm:$0xff]  }
  0x60   : > { %v4084_v27 = vld [vmem:[#allocation4 + $0x24] ss:$16 sps:$4 sm:$0xff]   ;;  %v4082_v29 = vld [vmem:[#allocation4 + $0x20] ss:$16 sps:$4 sm:$0xff]  }
  0x61   : > { %667 = vmatpush1.bf16.msra.mxu0 %v3569_v53  ;;  %708 = vmatpush1.bf16.msra.mxu1 %v3571_v54  ;;  %v4087_v28 = vld [vmem:[#allocation4 + $0x224] ss:$16 sps:$4 sm:$0xff]   ;;  %v4085_v30 = vld [vmem:[#allocation4 + $0x220] ss:$16 sps:$4 sm:$0xff]  }
  0x62   : > { %668 = vmatprep.subr.bf16.mxu0 %v3562_v55  ;;  %709 = vmatprep.subr.bf16.mxu1 %v3564_v57  ;;  %v4090_v31 = vld [vmem:[#allocation4 + $0x4] ss:$16 sps:$4 sm:$0xff]   ;;  %v4088_v33 = vld [vmem:[#allocation4] ss:$16 sps:$4 sm:$0xff]  }
  0x63   : > { %v4093_v32 = vld [vmem:[#allocation4 + $0x204] ss:$16 sps:$4 sm:$0xff]   ;;  %v4091_v34 = vld [vmem:[#allocation4 + $0x200] ss:$16 sps:$4 sm:$0xff]  }
  0x64   : > { %v4096_v35 = vld [vmem:[#allocation4 + $0x1e4] ss:$16 sps:$4 sm:$0xff]   ;;  %v4094_v37 = vld [vmem:[#allocation4 + $0x1e0] ss:$16 sps:$4 sm:$0xff]  }
  0x65   : > { %669 = vmatpush1.bf16.msra.mxu0 %v3561_v61  ;;  %710 = vmatpush1.bf16.msra.mxu1 %v3563_v62  ;;  %v4099_v36 = vld [vmem:[#allocation4 + $0x3e4] ss:$16 sps:$4 sm:$0xff]   ;;  %v4097_v38 = vld [vmem:[#allocation4 + $0x3e0] ss:$16 sps:$4 sm:$0xff]  }
  0x66   : > { %670 = vmatprep.subr.bf16.mxu0 %v3554_v63  ;;  %711 = vmatprep.subr.bf16.mxu1 %v3556_v1  ;;  %v4102_v39 = vld [vmem:[#allocation4 + $0x1c4] ss:$16 sps:$4 sm:$0xff]   ;;  %v4100_v41 = vld [vmem:[#allocation4 + $0x1c0] ss:$16 sps:$4 sm:$0xff]  }
  0x67   : > { %v4105_v40 = vld [vmem:[#allocation4 + $0x3c4] ss:$16 sps:$4 sm:$0xff]   ;;  %v4103_v42 = vld [vmem:[#allocation4 + $0x3c0] ss:$16 sps:$4 sm:$0xff]  }
  0x68   : > { %v4111_v44 = vld [vmem:[#allocation4 + $0x3a4] ss:$16 sps:$4 sm:$0xff]   ;;  %v4106_v45 = vld [vmem:[#allocation4 + $0x1a0] ss:$16 sps:$4 sm:$0xff]  }
  0x69   : > { %671 = vmatpush1.bf16.msra.mxu0 %v3553_v2  ;;  %712 = vmatpush1.bf16.msra.mxu1 %v3555_v3  ;;  %v4109_v46 = vld [vmem:[#allocation4 + $0x3a0] ss:$16 sps:$4 sm:$0xff]   ;;  %v4114_v47 = vld [vmem:[#allocation4 + $0x184] ss:$16 sps:$4 sm:$0xff]  }
  0x6a   : > { %2312 = vmatprep.subr.bf16.mxu0 %v4048_v4  ;;  %2353 = vmatprep.subr.bf16.mxu1 %v4051_v5  ;;  %v4117_v48 = vld [vmem:[#allocation4 + $0x384] ss:$16 sps:$4 sm:$0xff]   ;;  %v4112_v49 = vld [vmem:[#allocation4 + $0x180] ss:$16 sps:$4 sm:$0xff]  }
  0x6b   : > { %v4115_v50 = vld [vmem:[#allocation4 + $0x380] ss:$16 sps:$4 sm:$0xff]   ;;  %v4120_v51 = vld [vmem:[#allocation4 + $0x164] ss:$16 sps:$4 sm:$0xff]  }
  0x6c   : > { %3583 = vmatmul.mubr.msk.bf16.vlgmr.msra.gmra.mxu0 %vm570_vm0, %v368_v43  ;;  %3584 = vmatmul.mubr.msk.bf16.vlgmr.msra.gmra.mxu1 %vm570_vm0, %v368_v43  ;;  %v4108_v43 = vld [vmem:[#allocation4 + $0x1a4] ss:$16 sps:$4 sm:$0xff]   ;;  %v4118_v53 = vld [vmem:[#allocation4 + $0x160] ss:$16 sps:$4 sm:$0xff]  }
  0x6d   : > { %2313 = vmatpush1.bf16.msra.mxu0 %v4046_v6  ;;  %2354 = vmatpush1.bf16.msra.mxu1 %v4049_v0  ;;  %v4123_v52 = vld [vmem:[#allocation4 + $0x364] ss:$16 sps:$4 sm:$0xff]   ;;  %v4121_v54 = vld [vmem:[#allocation4 + $0x360] ss:$16 sps:$4 sm:$0xff]   ;;  %v370_v6 = vlaneseq }
  0x6e   : > { %2314 = vmatprep.subr.bf16.mxu0 %v4054_v7  ;;  %2355 = vmatprep.subr.bf16.mxu1 %v4057_v8  ;;  %v4126_v55 = vld [vmem:[#allocation4 + $0x144] ss:$16 sps:$4 sm:$0xff]   ;;  %v4124_v57 = vld [vmem:[#allocation4 + $0x140] ss:$16 sps:$4 sm:$0xff]  }
  0x6f   : > { %v4129_v56 = vld [vmem:[#allocation4 + $0x344] ss:$16 sps:$4 sm:$0xff]   ;;  %v4127_v58 = vld [vmem:[#allocation4 + $0x340] ss:$16 sps:$4 sm:$0xff]   ;;  %v4830_v0 = vshrl.u32 %v370_v6, 7 }
  0x70   : > { %v4132_v59 = vld [vmem:[#allocation4 + $0x124] ss:$16 sps:$4 sm:$0xff]   ;;  %v4130_v61 = vld [vmem:[#allocation4 + $0x120] ss:$16 sps:$4 sm:$0xff]  }
  0x71   : > { %2315 = vmatpush1.bf16.msra.mxu0 %v4052_v9  ;;  %2356 = vmatpush1.bf16.msra.mxu1 %v4055_v10  ;;  %v4135_v60 = vld [vmem:[#allocation4 + $0x324] ss:$16 sps:$4 sm:$0xff]   ;;  %v4133_v62 = vld [vmem:[#allocation4 + $0x320] ss:$16 sps:$4 sm:$0xff]   ;;  %v4833_v7 = vsub.s32 0, %v4830_v0  ;;  %v380_v9 = vsub.s32 2, %v4830_v0 }
  0x72   : > { %2316 = vmatprep.subr.bf16.mxu0 %v4060_v11  ;;  %2357 = vmatprep.subr.bf16.mxu1 %v4063_v12  ;;  %v4138_v63 = vld [vmem:[#allocation4 + $0x104] ss:$16 sps:$4 sm:$0xff]   ;;  %v4136_v2 = vld [vmem:[#allocation4 + $0x100] ss:$16 sps:$4 sm:$0xff]   ;;  %v4842_v10 = vsub.s32 1, %v4830_v0  ;;  %v384_v11 = vsub.s32 3, %v4830_v0 }
  0x73   : > { %v4141_v1 = vld [vmem:[#allocation4 + $0x304] ss:$16 sps:$4 sm:$0xff]   ;;  %v4139_v3 = vld [vmem:[#allocation4 + $0x300] ss:$16 sps:$4 sm:$0xff]  }
  0x74   : > { %v4144_v4 = vld [vmem:[#allocation4 + $0x4e4] ss:$16 sps:$4 sm:$0xff]  }
  0x75   : > { %2317 = vmatpush1.bf16.msra.mxu0 %v4058_v13  ;;  %2358 = vmatpush1.bf16.msra.mxu1 %v4061_v14  ;;  %v4147_v5 = vld [vmem:[#allocation4 + $0x6e4] ss:$16 sps:$4 sm:$0xff]  }
  0x76   : > { %2318 = vmatprep.subr.bf16.mxu0 %v4066_v15  ;;  %2359 = vmatprep.subr.bf16.mxu1 %v4069_v16  ;;  %v4838_v8 = vld [vmem:[%s4984_s6] sm:$0xff] }
  0x77   : > { %v373_v12 = vrot.slane %v4838_v8, %v4833_v7  ;;  %v381_v13 = vrot.slane %v4838_v8, %v380_v9  ;;  %v377_v14 = vrot.slane %v4838_v8, %v4842_v10  ;;  %v385_v16 = vrot.slane %v4838_v8, %v384_v11 }
  0x79   : > { %2319 = vmatpush1.bf16.msra.mxu0 %v4064_v17  ;;  %2360 = vmatpush1.bf16.msra.mxu1 %v4067_v18 }
  0x7a   : > { %2320 = vmatprep.subr.bf16.mxu0 %v4072_v19  ;;  %2361 = vmatprep.subr.bf16.mxu1 %v4075_v21 }
  0x7d   : > { %2321 = vmatpush1.bf16.msra.mxu0 %v4070_v20  ;;  %2362 = vmatpush1.bf16.msra.mxu1 %v4073_v22 }
  0x7e   : > { %2322 = vmatprep.subr.bf16.mxu0 %v4078_v23  ;;  %2363 = vmatprep.subr.bf16.mxu1 %v4081_v24 }
  0x81   : > { %2323 = vmatpush1.bf16.msra.mxu0 %v4076_v25  ;;  %2364 = vmatpush1.bf16.msra.mxu1 %v4079_v26 }
  0x82   : > { %2324 = vmatprep.subr.bf16.mxu0 %v4084_v27  ;;  %2365 = vmatprep.subr.bf16.mxu1 %v4087_v28 }
  0x85   : > { %2325 = vmatpush1.bf16.msra.mxu0 %v4082_v29  ;;  %2366 = vmatpush1.bf16.msra.mxu1 %v4085_v30 }
  0x86   : > { %2326 = vmatprep.subr.bf16.mxu0 %v4090_v31  ;;  %2367 = vmatprep.subr.bf16.mxu1 %v4093_v32 }
  0x89   : > { %2327 = vmatpush1.bf16.msra.mxu0 %v4088_v33  ;;  %2368 = vmatpush1.bf16.msra.mxu1 %v4091_v34  ;;  %v4142_v34 = vld [vmem:[#allocation4 + $0x4e0] ss:$16 sps:$4 sm:$0xff]  }
  0x8a   : > { %2328 = vmatprep.subr.bf16.mxu0 %v4096_v35  ;;  %2369 = vmatprep.subr.bf16.mxu1 %v4099_v36 }
  0x8d   : > { %2329 = vmatpush2.bf16.msra.mxu0 %v4094_v37  ;;  %2370 = vmatpush2.bf16.msra.mxu1 %v4097_v38  ;;  %v4145_v37 = vld [vmem:[#allocation4 + $0x6e0] ss:$16 sps:$4 sm:$0xff]   ;;  %v4150_v38 = vld [vmem:[#allocation4 + $0x4c4] ss:$16 sps:$4 sm:$0xff]  }
  0x8e   : > { %2330 = vmatprep.subr.bf16.mxu0 %v4102_v39  ;;  %2371 = vmatprep.subr.bf16.mxu1 %v4105_v40  ;;  %v4153_v39 = vld [vmem:[#allocation4 + $0x6c4] ss:$16 sps:$4 sm:$0xff]   ;;  %v4148_v40 = vld [vmem:[#allocation4 + $0x4c0] ss:$16 sps:$4 sm:$0xff]  }
  0x91   : > { %2331 = vmatpush2.bf16.msra.mxu0 %v4100_v41  ;;  %2372 = vmatpush2.bf16.msra.mxu1 %v4103_v42  ;;  %v392_v41 = vsub.s32 5, %v4830_v0  ;;  %v4151_v42 = vld [vmem:[#allocation4 + $0x6c0] ss:$16 sps:$4 sm:$0xff]  }
  0x92   : > { %2332 = vmatprep.subr.bf16.mxu0 %v4108_v43  ;;  %2373 = vmatprep.subr.bf16.mxu1 %v4111_v44  ;;  %v4156_v43 = vld [vmem:[#allocation4 + $0x4a4] ss:$16 sps:$4 sm:$0xff]   ;;  %v400_v44 = vsub.s32 7, %v4830_v0 }
  0x95   : > { %2333 = vmatpush2.bf16.msra.mxu0 %v4106_v45  ;;  %2374 = vmatpush2.bf16.msra.mxu1 %v4109_v46  ;;  %v4159_v45 = vld [vmem:[#allocation4 + $0x6a4] ss:$16 sps:$4 sm:$0xff]   ;;  %v4154_v46 = vld [vmem:[#allocation4 + $0x4a0] ss:$16 sps:$4 sm:$0xff]  }
  0x96   : > { %2334 = vmatprep.subr.bf16.mxu0 %v4114_v47  ;;  %2375 = vmatprep.subr.bf16.mxu1 %v4117_v48  ;;  %v393_v47 = vrot.slane %v4838_v8, %v392_v41  ;;  %v4157_v48 = vld [vmem:[#allocation4 + $0x6a0] ss:$16 sps:$4 sm:$0xff]  }
  0x97   : > { %v4205_v41 = vld [vmem:[#allocation4 + $0x7a0] ss:$16 sps:$4 sm:$0xff]  }
  0x99   : > { %2335 = vmatpush2.bf16.msra.mxu0 %v4112_v49  ;;  %2376 = vmatpush2.bf16.msra.mxu1 %v4115_v50  ;;  %v4162_v49 = vld [vmem:[#allocation4 + $0x484] ss:$16 sps:$4 sm:$0xff]  }
  0x9a   : > { %2336 = vmatprep.subr.bf16.mxu0 %v4120_v51  ;;  %2377 = vmatprep.subr.bf16.mxu1 %v4123_v52  ;;  %v401_v51 = vrot.slane %v4838_v8, %v400_v44  ;;  %v4165_v52 = vld [vmem:[#allocation4 + $0x684] ss:$16 sps:$4 sm:$0xff]   ;;  %v4208_v44 = vld [vmem:[#allocation4 + $0x580] ss:$16 sps:$4 sm:$0xff]  }
  0x9d   : > { %2337 = vmatpush2.bf16.msra.mxu0 %v4118_v53  ;;  %2378 = vmatpush2.bf16.msra.mxu1 %v4121_v54 }
  0x9e   : > { %2338 = vmatprep.subr.bf16.mxu0 %v4126_v55  ;;  %2379 = vmatprep.subr.bf16.mxu1 %v4129_v56  ;;  %v4160_v55 = vld [vmem:[#allocation4 + $0x480] ss:$16 sps:$4 sm:$0xff]  }
  0xa1   : > { %2339 = vmatpush2.bf16.msra.mxu0 %v4124_v57  ;;  %2380 = vmatpush2.bf16.msra.mxu1 %v4127_v58  ;;  %v4163_v58 = vld [vmem:[#allocation4 + $0x680] ss:$16 sps:$4 sm:$0xff]  }
  0xa2   : > { %2340 = vmatprep.subr.bf16.mxu0 %v4132_v59  ;;  %2381 = vmatprep.subr.bf16.mxu1 %v4135_v60  ;;  %v4168_v59 = vld [vmem:[#allocation4 + $0x464] ss:$16 sps:$4 sm:$0xff]  }
  0xa5   : > { %2341 = vmatpush2.bf16.msra.mxu0 %v4130_v61  ;;  %2382 = vmatpush2.bf16.msra.mxu1 %v4133_v62  ;;  %v4171_v62 = vld [vmem:[#allocation4 + $0x664] ss:$16 sps:$4 sm:$0xff]  }
  0xa6   : > { %2342 = vmatprep.subr.bf16.mxu0 %v4138_v63  ;;  %2383 = vmatprep.subr.bf16.mxu1 %v4141_v1 }
  0xa9   : > { %2343 = vmatpush2.bf16.msra.mxu0 %v4136_v2  ;;  %2384 = vmatpush2.bf16.msra.mxu1 %v4139_v3 }
  0xaa   : > { %2394 = vmatprep.subr.bf16.mxu0 %v4144_v4  ;;  %2435 = vmatprep.subr.bf16.mxu1 %v4147_v5  ;;  %v4166_v4 = vld [vmem:[#allocation4 + $0x460] ss:$16 sps:$4 sm:$0xff]  }
 0x11c   : > { %v608_v15 = vpop.f32.mrf.mxu0  ;;  %v649_v18 = vpop.f32.mrf.mxu1 }
 0x11d   : > { %v609_v17 = vadd.f32 %v608_v15, %v373_v12  ;;  %v650_v19 = vadd.f32 %v649_v18, %v381_v13  ;;  %v4169_v12 = vld [vmem:[#allocation4 + $0x660] ss:$16 sps:$4 sm:$0xff]   ;;  %v4174_v13 = vld [vmem:[#allocation4 + $0x444] ss:$16 sps:$4 sm:$0xff]  }
 0x11e   : > { %v610_v20 = vpop.f32.mrf.mxu0  ;;  %v651_v22 = vpop.f32.mrf.mxu1  ;;  %v4177_v15 = vld [vmem:[#allocation4 + $0x644] ss:$16 sps:$4 sm:$0xff]  }
 0x11f   : > { %v611_v21 = vadd.f32 %v610_v20, %v377_v14  ;;  %v738_v23 = vmax.f32 %v609_v17, 0.0  ;;  %v740_v24 = vmax.f32 %v650_v19, 0.0  ;;  %v652_v25 = vadd.f32 %v651_v22, %v385_v16  ;;  %v4172_v16 = vld [vmem:[#allocation4 + $0x440] ss:$16 sps:$4 sm:$0xff]   ;;  %v4180_v18 = vld [vmem:[#allocation4 + $0x424] ss:$16 sps:$4 sm:$0xff]  }
 0x120   : > { %v612_v26 = vpop.f32.mrf.mxu0  ;;  %v653_v28 = vpop.f32.mrf.mxu1  ;;  %v4175_v17 = vld [vmem:[#allocation4 + $0x640] ss:$16 sps:$4 sm:$0xff]   ;;  %v4183_v19 = vld [vmem:[#allocation4 + $0x624] ss:$16 sps:$4 sm:$0xff]  }
 0x121   : > { %v739_v27 = vmax.f32 %v611_v21, 0.0  ;;  %v741_v29 = vmax.f32 %v652_v25, 0.0  ;;  %v4855_v31 = vpack.c.bf16 %v740_v24, %v740_v24  ;;  %v4859_v35 = vpack.c.bf16 %v738_v23, %v738_v23  ;;  %v4178_v20 = vld [vmem:[#allocation4 + $0x420] ss:$16 sps:$4 sm:$0xff]   ;;  %v4186_v22 = vld [vmem:[#allocation4 + $0x404] ss:$16 sps:$4 sm:$0xff]  }
 0x122   : > { %v613_v30 = vpop.f32.mrf.mxu0  ;;  %v654_v33 = vpop.f32.mrf.mxu1  ;;  %v4181_v21 = vld [vmem:[#allocation4 + $0x620] ss:$16 sps:$4 sm:$0xff]   ;;  %v4189_v23 = vld [vmem:[#allocation4 + $0x604] ss:$16 sps:$4 sm:$0xff]  }
 0x123   : > { %v4857_v32 = vpack.c.bf16 %v739_v27, %v739_v27  ;;  %v4861_v36 = vpack.c.bf16 %v741_v29, %v741_v29  ;;  %v4184_v24 = vld [vmem:[#allocation4 + $0x400] ss:$16 sps:$4 sm:$0xff]   ;;  %v4192_v26 = vld [vmem:[#allocation4 + $0x5e4] ss:$16 sps:$4 sm:$0xff]  }
 0x124   : > { %v4187_v25 = vld [vmem:[#allocation4 + $0x600] ss:$16 sps:$4 sm:$0xff]   ;;  %v4195_v27 = vld [vmem:[#allocation4 + $0x7e4] ss:$16 sps:$4 sm:$0xff]  }
 0x125   : > { %2344 = vmatprep.mubr.bf16.mxu0 %v4857_v32  ;;  %2385 = vmatprep.mubr.bf16.mxu1 %v4861_v36  ;;  %v4190_v28 = vld [vmem:[#allocation4 + $0x5e0] ss:$16 sps:$4 sm:$0xff]   ;;  %v4198_v30 = vld [vmem:[#allocation4 + $0x5c4] ss:$16 sps:$4 sm:$0xff]  }
 0x126   : > { %2345 = vmatmul.mubr.bf16.vlgmr.msra.gmra.mxu0 %v4859_v35  ;;  %2386 = vmatmul.mubr.bf16.vlgmr.msra.gmra.mxu1 %v4855_v31  ;;  %v4193_v29 = vld [vmem:[#allocation4 + $0x7e0] ss:$16 sps:$4 sm:$0xff]   ;;  %v4201_v33 = vld [vmem:[#allocation4 + $0x7c4] ss:$16 sps:$4 sm:$0xff]  }
 0x127   : > { %2395 = vmatpush1.bf16.msra.mxu0 %v4142_v34  ;;  %2436 = vmatpush1.bf16.msra.mxu1 %v4145_v37  ;;  %v4196_v34 = vld [vmem:[#allocation4 + $0x5c0] ss:$16 sps:$4 sm:$0xff]  }
 0x128   : > { %2396 = vmatprep.subr.bf16.mxu0 %v4150_v38  ;;  %2437 = vmatprep.subr.bf16.mxu1 %v4153_v39  ;;  %v4199_v37 = vld [vmem:[#allocation4 + $0x7c0] ss:$16 sps:$4 sm:$0xff]   ;;  %v4204_v38 = vld [vmem:[#allocation4 + $0x5a4] ss:$16 sps:$4 sm:$0xff]  }
 0x129   : > { %v4207_v39 = vld [vmem:[#allocation4 + $0x7a4] ss:$16 sps:$4 sm:$0xff]  }
 0x12b   : > { %2397 = vmatpush1.bf16.msra.mxu0 %v4148_v40  ;;  %2438 = vmatpush1.bf16.msra.mxu1 %v4151_v42  ;;  %v4202_v40 = vld [vmem:[#allocation4 + $0x5a0] ss:$16 sps:$4 sm:$0xff]   ;;  %v4210_v42 = vld [vmem:[#allocation4 + $0x584] ss:$16 sps:$4 sm:$0xff]  }
 0x12c   : > { %2398 = vmatprep.subr.bf16.mxu0 %v4156_v43  ;;  %v4870_v50 = vpop.f32.mrf.mxu0  ;;  %2439 = vmatprep.subr.bf16.mxu1 %v4159_v45  ;;  %v4873_v53 = vpop.f32.mrf.mxu1  ;;  %v4213_v43 = vld [vmem:[#allocation4 + $0x784] ss:$16 sps:$4 sm:$0xff]   ;;  %v4211_v45 = vld [vmem:[#allocation4 + $0x780] ss:$16 sps:$4 sm:$0xff]  }
 0x12e   : > { %v692_v54 = vpop.f32.mrf.mxu0  ;;  %v733_v57 = vpop.f32.mrf.mxu1 }
 0x12f   : > { %2399 = vmatpush1.bf16.msra.mxu0 %v4154_v46  ;;  %v693_v56 = vadd.f32 %v692_v54, %v393_v47  ;;  %2440 = vmatpush1.bf16.msra.mxu1 %v4157_v48  ;;  %v734_v61 = vadd.f32 %v733_v57, %v401_v51  ;;  %v4216_v46 = vld [vmem:[#allocation4 + $0x564] ss:$16 sps:$4 sm:$0xff]   ;;  %v4214_v48 = vld [vmem:[#allocation4 + $0x560] ss:$16 sps:$4 sm:$0xff]  }
 0x130   : > { %2400 = vmatprep.subr.bf16.mxu0 %v4162_v49  ;;  %v694_v60 = vpop.f32.mrf.mxu0  ;;  %2441 = vmatprep.subr.bf16.mxu1 %v4165_v52  ;;  %v735_v1 = vpop.f32.mrf.mxu1  ;;  %v4219_v47 = vld [vmem:[#allocation4 + $0x764] ss:$16 sps:$4 sm:$0xff]   ;;  %v396_v49 = vsub.s32 6, %v4830_v0  ;;  %v4217_v51 = vld [vmem:[#allocation4 + $0x760] ss:$16 sps:$4 sm:$0xff]   ;;  %v388_v52 = vsub.s32 4, %v4830_v0 }
 0x131   : > { %v743_v63 = vmax.f32 %v693_v56, 0.0  ;;  %v745_v2 = vmax.f32 %v734_v61, 0.0  ;;  %v4222_v54 = vld [vmem:[#allocation4 + $0x544] ss:$16 sps:$4 sm:$0xff]   ;;  %v4220_v57 = vld [vmem:[#allocation4 + $0x540] ss:$16 sps:$4 sm:$0xff]  }
 0x132   : > { %v695_v3 = vpop.f32.mrf.mxu0  ;;  %v736_v6 = vpop.f32.mrf.mxu1  ;;  %v397_v56 = vrot.slane %v4838_v8, %v396_v49  ;;  %v4228_v60 = vld [vmem:[#allocation4 + $0x524] ss:$16 sps:$4 sm:$0xff]   ;;  %v4288_v49 = vld [vmem:[#allocation4 + $0x1ec] ss:$16 sps:$4 sm:$0xff]  }
 0x133   : > { %2401 = vmatpush1.bf16.msra.mxu0 %v4160_v55  ;;  %v4875_v5 = vpack.c.bf16 %v743_v63, %v743_v63  ;;  %2442 = vmatpush1.bf16.msra.mxu1 %v4163_v58  ;;  %v4877_v14 = vpack.c.bf16 %v745_v2, %v745_v2  ;;  %v4225_v55 = vld [vmem:[#allocation4 + $0x744] ss:$16 sps:$4 sm:$0xff]   ;;  %v389_v58 = vrot.slane %v4838_v8, %v388_v52  ;;  %v4226_v63 = vld [vmem:[#allocation4 + $0x520] ss:$16 sps:$4 sm:$0xff]   ;;  %v4286_v52 = vld [vmem:[#allocation4 + $0x1e8] ss:$16 sps:$4 sm:$0xff]  }
 0x134   : > { %2402 = vmatprep.subr.bf16.mxu0 %v4168_v59  ;;  %2443 = vmatprep.subr.bf16.mxu1 %v4171_v62  ;;  %v4223_v59 = vld [vmem:[#allocation4 + $0x740] ss:$16 sps:$4 sm:$0xff]   ;;  %v4231_v61 = vld [vmem:[#allocation4 + $0x724] ss:$16 sps:$4 sm:$0xff]   ;;  %v732_v62 = vadd.f32 %v4873_v53, %v397_v56  ;;  %v4243_v53 = vld [vmem:[#allocation4 + $0x2ec] ss:$16 sps:$4 sm:$0xff]  }
 0x135   : > { %2426 = vmatprep.mubr.bf16.mxu0 %v4875_v5  ;;  %2467 = vmatprep.mubr.bf16.mxu1 %v4877_v14  ;;  %v691_v1 = vadd.f32 %v4870_v50, %v389_v58  ;;  %v4229_v2 = vld [vmem:[#allocation4 + $0x720] ss:$16 sps:$4 sm:$0xff]   ;;  %v4234_v3 = vld [vmem:[#allocation4 + $0x504] ss:$16 sps:$4 sm:$0xff]   ;;  %v4238_v50 = vld [vmem:[#allocation4 + $0xe8] ss:$16 sps:$4 sm:$0xff]  }
 0x136   : > { %v744_v6 = vmax.f32 %v732_v62, 0.0  ;;  %v4232_v8 = vld [vmem:[#allocation4 + $0x500] ss:$16 sps:$4 sm:$0xff]   ;;  %v4297_v56 = vld [vmem:[#allocation4 + $0x3cc] ss:$16 sps:$4 sm:$0xff]  }
 0x137   : > { %2403 = vmatpush1.bf16.msra.mxu0 %v4166_v4  ;;  %2444 = vmatpush1.bf16.msra.mxu1 %v4169_v12  ;;  %v4237_v4 = vld [vmem:[#allocation4 + $0x704] ss:$16 sps:$4 sm:$0xff]   ;;  %v742_v12 = vmax.f32 %v691_v1, 0.0  ;;  %v4295_v58 = vld [vmem:[#allocation4 + $0x3c8] ss:$16 sps:$4 sm:$0xff]  }
 0x138   : > { %2404 = vmatprep.subr.bf16.mxu0 %v4174_v13  ;;  %2445 = vmatprep.subr.bf16.mxu1 %v4177_v15  ;;  %v4235_v13 = vld [vmem:[#allocation4 + $0x700] ss:$16 sps:$4 sm:$0xff]   ;;  %v4240_v15 = vld [vmem:[#allocation4 + $0xec] ss:$16 sps:$4 sm:$0xff]   ;;  %v4301_v62 = vld [vmem:[#allocation4 + $0x3a8] ss:$16 sps:$4 sm:$0xff]  }
 0x139   : > { %v4309_v1 = vld [vmem:[#allocation4 + $0x38c] ss:$16 sps:$4 sm:$0xff]  }
 0x13b   : > { %2405 = vmatpush1.bf16.msra.mxu0 %v4172_v16  ;;  %2446 = vmatpush1.bf16.msra.mxu1 %v4175_v17  ;;  %v4887_v16 = vpack.c.bf16 %v744_v6, %v744_v6  ;;  %v4889_v17 = vpack.c.bf16 %v742_v12, %v742_v12  ;;  %v4315_v6 = vld [vmem:[#allocation4 + $0x36c] ss:$16 sps:$4 sm:$0xff]   ;;  %v4313_v12 = vld [vmem:[#allocation4 + $0x368] ss:$16 sps:$4 sm:$0xff]  }
 0x13c   : > { %2406 = vmatprep.subr.bf16.mxu0 %v4180_v18  ;;  %2447 = vmatprep.subr.bf16.mxu1 %v4183_v19  ;;  %v4241_v18 = vld [vmem:[#allocation4 + $0x2e8] ss:$16 sps:$4 sm:$0xff]   ;;  %v4246_v19 = vld [vmem:[#allocation4 + $0xcc] ss:$16 sps:$4 sm:$0xff]  }
 0x13f   : > { %2407 = vmatpush1.bf16.msra.mxu0 %v4178_v20  ;;  %2448 = vmatpush1.bf16.msra.mxu1 %v4181_v21  ;;  %v4249_v20 = vld [vmem:[#allocation4 + $0x2cc] ss:$16 sps:$4 sm:$0xff]   ;;  %v4244_v21 = vld [vmem:[#allocation4 + $0xc8] ss:$16 sps:$4 sm:$0xff]  }
 0x140   : > { %2408 = vmatprep.subr.bf16.mxu0 %v4186_v22  ;;  %2449 = vmatprep.subr.bf16.mxu1 %v4189_v23  ;;  %v4247_v22 = vld [vmem:[#allocation4 + $0x2c8] ss:$16 sps:$4 sm:$0xff]   ;;  %v4252_v23 = vld [vmem:[#allocation4 + $0xac] ss:$16 sps:$4 sm:$0xff]  }
 0x143   : > { %2409 = vmatpush1.bf16.msra.mxu0 %v4184_v24  ;;  %2450 = vmatpush1.bf16.msra.mxu1 %v4187_v25  ;;  %v4255_v24 = vld [vmem:[#allocation4 + $0x2ac] ss:$16 sps:$4 sm:$0xff]   ;;  %v4250_v25 = vld [vmem:[#allocation4 + $0xa8] ss:$16 sps:$4 sm:$0xff]  }
 0x144   : > { %2410 = vmatprep.subr.bf16.mxu0 %v4192_v26  ;;  %2451 = vmatprep.subr.bf16.mxu1 %v4195_v27  ;;  %v4253_v26 = vld [vmem:[#allocation4 + $0x2a8] ss:$16 sps:$4 sm:$0xff]   ;;  %v4258_v27 = vld [vmem:[#allocation4 + $0x8c] ss:$16 sps:$4 sm:$0xff]  }
 0x147   : > { %2411 = vmatpush2.bf16.msra.mxu0 %v4190_v28  ;;  %2452 = vmatpush2.bf16.msra.mxu1 %v4193_v29  ;;  %v4261_v28 = vld [vmem:[#allocation4 + $0x28c] ss:$16 sps:$4 sm:$0xff]   ;;  %v4256_v29 = vld [vmem:[#allocation4 + $0x88] ss:$16 sps:$4 sm:$0xff]  }
 0x148   : > { %2412 = vmatprep.subr.bf16.mxu0 %v4198_v30  ;;  %2453 = vmatprep.subr.bf16.mxu1 %v4201_v33  ;;  %v4264_v30 = vld [vmem:[#allocation4 + $0x6c] ss:$16 sps:$4 sm:$0xff]  }
 0x149   : > { %v4267_v33 = vld [vmem:[#allocation4 + $0x26c] ss:$16 sps:$4 sm:$0xff]  }
 0x14b   : > { %2413 = vmatpush2.bf16.msra.mxu0 %v4196_v34  ;;  %2454 = vmatpush2.bf16.msra.mxu1 %v4199_v37  ;;  %v4265_v34 = vld [vmem:[#allocation4 + $0x268] ss:$16 sps:$4 sm:$0xff]   ;;  %v4270_v37 = vld [vmem:[#allocation4 + $0x4c] ss:$16 sps:$4 sm:$0xff]  }
 0x14c   : > { %2414 = vmatprep.subr.bf16.mxu0 %v4204_v38  ;;  %2455 = vmatprep.subr.bf16.mxu1 %v4207_v39  ;;  %v4273_v38 = vld [vmem:[#allocation4 + $0x24c] ss:$16 sps:$4 sm:$0xff]   ;;  %v4268_v39 = vld [vmem:[#allocation4 + $0x48] ss:$16 sps:$4 sm:$0xff]  }
 0x14f   : > { %2415 = vmatpush2.bf16.msra.mxu0 %v4202_v40  ;;  %2456 = vmatpush2.bf16.msra.mxu1 %v4205_v41  ;;  %v4271_v40 = vld [vmem:[#allocation4 + $0x248] ss:$16 sps:$4 sm:$0xff]   ;;  %v4276_v41 = vld [vmem:[#allocation4 + $0x2c] ss:$16 sps:$4 sm:$0xff]  }
 0x150   : > { %2416 = vmatprep.subr.bf16.mxu0 %v4210_v42  ;;  %2457 = vmatprep.subr.bf16.mxu1 %v4213_v43  ;;  %v4279_v42 = vld [vmem:[#allocation4 + $0x22c] ss:$16 sps:$4 sm:$0xff]   ;;  %v4274_v43 = vld [vmem:[#allocation4 + $0x28] ss:$16 sps:$4 sm:$0xff]  }
 0x153   : > { %2417 = vmatpush2.bf16.msra.mxu0 %v4208_v44  ;;  %2458 = vmatpush2.bf16.msra.mxu1 %v4211_v45  ;;  %v4277_v44 = vld [vmem:[#allocation4 + $0x228] ss:$16 sps:$4 sm:$0xff]   ;;  %v4282_v45 = vld [vmem:[#allocation4 + $0xc] ss:$16 sps:$4 sm:$0xff]  }
 0x154   : > { %2418 = vmatprep.subr.bf16.mxu0 %v4216_v46  ;;  %2459 = vmatprep.subr.bf16.mxu1 %v4219_v47  ;;  %v4285_v46 = vld [vmem:[#allocation4 + $0x20c] ss:$16 sps:$4 sm:$0xff]   ;;  %v4280_v47 = vld [vmem:[#allocation4 + $0x8] ss:$16 sps:$4 sm:$0xff]  }
 0x157   : > { %2419 = vmatpush2.bf16.msra.mxu0 %v4214_v48  ;;  %2460 = vmatpush2.bf16.msra.mxu1 %v4217_v51  ;;  %v4283_v48 = vld [vmem:[#allocation4 + $0x208] ss:$16 sps:$4 sm:$0xff]   ;;  %v4291_v51 = vld [vmem:[#allocation4 + $0x3ec] ss:$16 sps:$4 sm:$0xff]  }
 0x158   : > { %2420 = vmatprep.subr.bf16.mxu0 %v4222_v54  ;;  %2461 = vmatprep.subr.bf16.mxu1 %v4225_v55  ;;  %v4289_v54 = vld [vmem:[#allocation4 + $0x3e8] ss:$16 sps:$4 sm:$0xff]   ;;  %v4294_v55 = vld [vmem:[#allocation4 + $0x1cc] ss:$16 sps:$4 sm:$0xff]  }
 0x15b   : > { %2421 = vmatpush2.bf16.msra.mxu0 %v4220_v57  ;;  %2462 = vmatpush2.bf16.msra.mxu1 %v4223_v59  ;;  %v4292_v57 = vld [vmem:[#allocation4 + $0x1c8] ss:$16 sps:$4 sm:$0xff]   ;;  %v4300_v59 = vld [vmem:[#allocation4 + $0x1ac] ss:$16 sps:$4 sm:$0xff]  }
 0x15c   : > { %2422 = vmatprep.subr.bf16.mxu0 %v4228_v60  ;;  %2463 = vmatprep.subr.bf16.mxu1 %v4231_v61  ;;  %v4303_v60 = vld [vmem:[#allocation4 + $0x3ac] ss:$16 sps:$4 sm:$0xff]   ;;  %v4298_v61 = vld [vmem:[#allocation4 + $0x1a8] ss:$16 sps:$4 sm:$0xff]  }
 0x15f   : > { %2423 = vmatpush2.bf16.msra.mxu0 %v4226_v63  ;;  %2464 = vmatpush2.bf16.msra.mxu1 %v4229_v2  ;;  %v4306_v63 = vld [vmem:[#allocation4 + $0x18c] ss:$16 sps:$4 sm:$0xff]   ;;  %v4304_v2 = vld [vmem:[#allocation4 + $0x188] ss:$16 sps:$4 sm:$0xff]  }
 0x160   : > { %2424 = vmatprep.subr.bf16.mxu0 %v4234_v3  ;;  %2465 = vmatprep.subr.bf16.mxu1 %v4237_v4  ;;  %v4307_v3 = vld [vmem:[#allocation4 + $0x388] ss:$16 sps:$4 sm:$0xff]   ;;  %v4312_v4 = vld [vmem:[#allocation4 + $0x16c] ss:$16 sps:$4 sm:$0xff]  }
 0x163   : > { %2425 = vmatpush2.bf16.msra.mxu0 %v4232_v8  ;;  %2466 = vmatpush2.bf16.msra.mxu1 %v4235_v13  ;;  %v4310_v8 = vld [vmem:[#allocation4 + $0x168] ss:$16 sps:$4 sm:$0xff]   ;;  %v4318_v13 = vld [vmem:[#allocation4 + $0x14c] ss:$16 sps:$4 sm:$0xff]  }
 0x164   : > { %2476 = vmatprep.subr.bf16.mxu0 %v4240_v15  ;;  %2517 = vmatprep.subr.bf16.mxu1 %v4243_v53  ;;  %v4321_v15 = vld [vmem:[#allocation4 + $0x34c] ss:$16 sps:$4 sm:$0xff]   ;;  %v4316_v53 = vld [vmem:[#allocation4 + $0x148] ss:$16 sps:$4 sm:$0xff]  }
 0x166   : > { %2427 = vmatmul.mubr.bf16.vlgmr.msra.gmra.mxu0 %v4889_v17  ;;  %2468 = vmatmul.mubr.bf16.vlgmr.msra.gmra.mxu1 %v4887_v16 }
 0x167   : > { %2477 = vmatpush1.bf16.msra.mxu0 %v4238_v50  ;;  %2508 = vmatprep.mubr.bf16.mxu0 %v4857_v32  ;;  %v4259_v32 = vld [vmem:[#allocation4 + $0x288] ss:$16 sps:$4 sm:$0xff]  }
 0x168   : > { %2518 = vmatpush1.bf16.msra.mxu1 %v4241_v18  ;;  %2549 = vmatprep.mubr.bf16.mxu1 %v4861_v36  ;;  %v4262_v36 = vld [vmem:[#allocation4 + $0x68] ss:$16 sps:$4 sm:$0xff]   ;;  %v4324_v18 = vld [vmem:[#allocation4 + $0x12c] ss:$16 sps:$4 sm:$0xff]  }
 0x169   : > { %2478 = vmatprep.subr.bf16.mxu0 %v4246_v19  ;;  %2519 = vmatprep.subr.bf16.mxu1 %v4249_v20  ;;  %v4319_v50 = vld [vmem:[#allocation4 + $0x348] ss:$16 sps:$4 sm:$0xff]   ;;  %v4327_v19 = vld [vmem:[#allocation4 + $0x32c] ss:$16 sps:$4 sm:$0xff]  }
 0x16a   : > { %v4322_v20 = vld [vmem:[#allocation4 + $0x128] ss:$16 sps:$4 sm:$0xff]  }
 0x16b   : > { %2479 = vmatpush1.bf16.msra.mxu0 %v4244_v21  ;;  %v4325_v21 = vld [vmem:[#allocation4 + $0x328] ss:$16 sps:$4 sm:$0xff]  }
 0x16c   : > { %2520 = vmatpush1.bf16.msra.mxu1 %v4247_v22  ;;  %2480 = vmatprep.subr.bf16.mxu0 %v4252_v23  ;;  %v4330_v22 = vld [vmem:[#allocation4 + $0x10c] ss:$16 sps:$4 sm:$0xff]  }
 0x16d   : > { %2521 = vmatprep.subr.bf16.mxu1 %v4255_v24  ;;  %v4333_v23 = vld [vmem:[#allocation4 + $0x30c] ss:$16 sps:$4 sm:$0xff]   ;;  %v4328_v24 = vld [vmem:[#allocation4 + $0x108] ss:$16 sps:$4 sm:$0xff]  }
 0x16f   : > { %2481 = vmatpush1.bf16.msra.mxu0 %v4250_v25  ;;  %v4331_v25 = vld [vmem:[#allocation4 + $0x308] ss:$16 sps:$4 sm:$0xff]  }
 0x170   : > { %2522 = vmatpush1.bf16.msra.mxu1 %v4253_v26  ;;  %2482 = vmatprep.subr.bf16.mxu0 %v4258_v27  ;;  %v4336_v26 = vld [vmem:[#allocation4 + $0x4ec] ss:$16 sps:$4 sm:$0xff]  }
 0x171   : > { %2523 = vmatprep.subr.bf16.mxu1 %v4261_v28  ;;  %v4339_v27 = vld [vmem:[#allocation4 + $0x6ec] ss:$16 sps:$4 sm:$0xff]   ;;  %v4334_v28 = vld [vmem:[#allocation4 + $0x4e8] ss:$16 sps:$4 sm:$0xff]  }
 0x173   : > { %2483 = vmatpush1.bf16.msra.mxu0 %v4256_v29  ;;  %v4337_v29 = vld [vmem:[#allocation4 + $0x6e8] ss:$16 sps:$4 sm:$0xff]  }
 0x174   : > { %2524 = vmatpush1.bf16.msra.mxu1 %v4259_v32  ;;  %2484 = vmatprep.subr.bf16.mxu0 %v4264_v30  ;;  %v4342_v32 = vld [vmem:[#allocation4 + $0x4cc] ss:$16 sps:$4 sm:$0xff]  }
 0x175   : > { %2525 = vmatprep.subr.bf16.mxu1 %v4267_v33  ;;  %v4345_v30 = vld [vmem:[#allocation4 + $0x6cc] ss:$16 sps:$4 sm:$0xff]   ;;  %v4340_v33 = vld [vmem:[#allocation4 + $0x4c8] ss:$16 sps:$4 sm:$0xff]  }
 0x177   : > { %2485 = vmatpush1.bf16.msra.mxu0 %v4262_v36  ;;  %v4343_v36 = vld [vmem:[#allocation4 + $0x6c8] ss:$16 sps:$4 sm:$0xff]  }
 0x178   : > { %2526 = vmatpush1.bf16.msra.mxu1 %v4265_v34  ;;  %2486 = vmatprep.subr.bf16.mxu0 %v4270_v37  ;;  %v4348_v34 = vld [vmem:[#allocation4 + $0x4ac] ss:$16 sps:$4 sm:$0xff]  }
 0x179   : > { %2527 = vmatprep.subr.bf16.mxu1 %v4273_v38  ;;  %v4351_v37 = vld [vmem:[#allocation4 + $0x6ac] ss:$16 sps:$4 sm:$0xff]   ;;  %v4346_v38 = vld [vmem:[#allocation4 + $0x4a8] ss:$16 sps:$4 sm:$0xff]  }
 0x17b   : > { %2487 = vmatpush1.bf16.msra.mxu0 %v4268_v39  ;;  %v4354_v39 = vld [vmem:[#allocation4 + $0x48c] ss:$16 sps:$4 sm:$0xff]  }
 0x17c   : > { %2528 = vmatpush1.bf16.msra.mxu1 %v4271_v40  ;;  %2488 = vmatprep.subr.bf16.mxu0 %v4276_v41  ;;  %v4352_v40 = vld [vmem:[#allocation4 + $0x488] ss:$16 sps:$4 sm:$0xff]   ;;  %v4360_v41 = vld [vmem:[#allocation4 + $0x46c] ss:$16 sps:$4 sm:$0xff]  }
 0x17d   : > { %2529 = vmatprep.subr.bf16.mxu1 %v4279_v42  ;;  %v4363_v42 = vld [vmem:[#allocation4 + $0x66c] ss:$16 sps:$4 sm:$0xff]  }
 0x17f   : > { %2489 = vmatpush1.bf16.msra.mxu0 %v4274_v43  ;;  %v4361_v43 = vld [vmem:[#allocation4 + $0x668] ss:$16 sps:$4 sm:$0xff]  }
 0x180   : > { %2530 = vmatpush1.bf16.msra.mxu1 %v4277_v44  ;;  %2490 = vmatprep.subr.bf16.mxu0 %v4282_v45  ;;  %v4366_v44 = vld [vmem:[#allocation4 + $0x44c] ss:$16 sps:$4 sm:$0xff]  }
 0x181   : > { %2531 = vmatprep.subr.bf16.mxu1 %v4285_v46  ;;  %v4369_v45 = vld [vmem:[#allocation4 + $0x64c] ss:$16 sps:$4 sm:$0xff]   ;;  %v4364_v46 = vld [vmem:[#allocation4 + $0x448] ss:$16 sps:$4 sm:$0xff]  }
 0x183   : > { %2491 = vmatpush1.bf16.msra.mxu0 %v4280_v47  ;;  %v4367_v47 = vld [vmem:[#allocation4 + $0x648] ss:$16 sps:$4 sm:$0xff]  }
 0x184   : > { %2532 = vmatpush1.bf16.msra.mxu1 %v4283_v48  ;;  %2492 = vmatprep.subr.bf16.mxu0 %v4288_v49  ;;  %v4372_v48 = vld [vmem:[#allocation4 + $0x42c] ss:$16 sps:$4 sm:$0xff]  }
 0x185   : > { %2533 = vmatprep.subr.bf16.mxu1 %v4291_v51  ;;  %v4375_v49 = vld [vmem:[#allocation4 + $0x62c] ss:$16 sps:$4 sm:$0xff]   ;;  %v4370_v51 = vld [vmem:[#allocation4 + $0x428] ss:$16 sps:$4 sm:$0xff]  }
 0x187   : > { %2493 = vmatpush2.bf16.msra.mxu0 %v4286_v52  ;;  %v4373_v52 = vld [vmem:[#allocation4 + $0x628] ss:$16 sps:$4 sm:$0xff]  }
 0x188   : > { %2534 = vmatpush2.bf16.msra.mxu1 %v4289_v54  ;;  %2494 = vmatprep.subr.bf16.mxu0 %v4294_v55  ;;  %v4378_v54 = vld [vmem:[#allocation4 + $0x40c] ss:$16 sps:$4 sm:$0xff]  }
 0x189   : > { %2535 = vmatprep.subr.bf16.mxu1 %v4297_v56  ;;  %v4381_v55 = vld [vmem:[#allocation4 + $0x60c] ss:$16 sps:$4 sm:$0xff]   ;;  %v4376_v56 = vld [vmem:[#allocation4 + $0x408] ss:$16 sps:$4 sm:$0xff]  }
 0x18b   : > { %2495 = vmatpush2.bf16.msra.mxu0 %v4292_v57  ;;  %v4379_v57 = vld [vmem:[#allocation4 + $0x608] ss:$16 sps:$4 sm:$0xff]  }
 0x18c   : > { %2536 = vmatpush2.bf16.msra.mxu1 %v4295_v58  ;;  %2496 = vmatprep.subr.bf16.mxu0 %v4300_v59  ;;  %v4384_v58 = vld [vmem:[#allocation4 + $0x5ec] ss:$16 sps:$4 sm:$0xff]  }
 0x18d   : > { %2537 = vmatprep.subr.bf16.mxu1 %v4303_v60  ;;  %v4387_v59 = vld [vmem:[#allocation4 + $0x7ec] ss:$16 sps:$4 sm:$0xff]   ;;  %v4382_v60 = vld [vmem:[#allocation4 + $0x5e8] ss:$16 sps:$4 sm:$0xff]  }
 0x18f   : > { %2497 = vmatpush2.bf16.msra.mxu0 %v4298_v61  ;;  %v4385_v61 = vld [vmem:[#allocation4 + $0x7e8] ss:$16 sps:$4 sm:$0xff]  }
 0x190   : > { %2538 = vmatpush2.bf16.msra.mxu1 %v4301_v62  ;;  %2498 = vmatprep.subr.bf16.mxu0 %v4306_v63  ;;  %v4390_v62 = vld [vmem:[#allocation4 + $0x5cc] ss:$16 sps:$4 sm:$0xff]  }
 0x191   : > { %2539 = vmatprep.subr.bf16.mxu1 %v4309_v1  ;;  %v4393_v63 = vld [vmem:[#allocation4 + $0x7cc] ss:$16 sps:$4 sm:$0xff]   ;;  %v4388_v1 = vld [vmem:[#allocation4 + $0x5c8] ss:$16 sps:$4 sm:$0xff]  }
 0x193   : > { %2499 = vmatpush2.bf16.msra.mxu0 %v4304_v2  ;;  %v4391_v2 = vld [vmem:[#allocation4 + $0x7c8] ss:$16 sps:$4 sm:$0xff]  }
 0x194   : > { %2540 = vmatpush2.bf16.msra.mxu1 %v4307_v3  ;;  %2500 = vmatprep.subr.bf16.mxu0 %v4312_v4  ;;  %v4396_v3 = vld [vmem:[#allocation4 + $0x5ac] ss:$16 sps:$4 sm:$0xff]  }
 0x195   : > { %2541 = vmatprep.subr.bf16.mxu1 %v4315_v6  ;;  %v4399_v4 = vld [vmem:[#allocation4 + $0x7ac] ss:$16 sps:$4 sm:$0xff]   ;;  %v4394_v6 = vld [vmem:[#allocation4 + $0x5a8] ss:$16 sps:$4 sm:$0xff]  }
 0x197   : > { %2501 = vmatpush2.bf16.msra.mxu0 %v4310_v8  ;;  %v4397_v8 = vld [vmem:[#allocation4 + $0x7a8] ss:$16 sps:$4 sm:$0xff]  }
 0x198   : > { %2542 = vmatpush2.bf16.msra.mxu1 %v4313_v12  ;;  %2502 = vmatprep.subr.bf16.mxu0 %v4318_v13  ;;  %v4402_v12 = vld [vmem:[#allocation4 + $0x58c] ss:$16 sps:$4 sm:$0xff]  }
 0x199   : > { %2543 = vmatprep.subr.bf16.mxu1 %v4321_v15  ;;  %v4405_v13 = vld [vmem:[#allocation4 + $0x78c] ss:$16 sps:$4 sm:$0xff]   ;;  %v4400_v15 = vld [vmem:[#allocation4 + $0x588] ss:$16 sps:$4 sm:$0xff]  }
 0x19b   : > { %2503 = vmatpush2.bf16.msra.mxu0 %v4316_v53  ;;  %v4403_v53 = vld [vmem:[#allocation4 + $0x788] ss:$16 sps:$4 sm:$0xff]  }
 0x19c   : > { %2544 = vmatpush2.bf16.msra.mxu1 %v4319_v50  ;;  %2504 = vmatprep.subr.bf16.mxu0 %v4324_v18  ;;  %v4408_v50 = vld [vmem:[#allocation4 + $0x56c] ss:$16 sps:$4 sm:$0xff]  }
 0x19d   : > { %2545 = vmatprep.subr.bf16.mxu1 %v4327_v19  ;;  %v4411_v18 = vld [vmem:[#allocation4 + $0x76c] ss:$16 sps:$4 sm:$0xff]   ;;  %v4406_v19 = vld [vmem:[#allocation4 + $0x568] ss:$16 sps:$4 sm:$0xff]  }
 0x19f   : > { %2505 = vmatpush2.bf16.msra.mxu0 %v4322_v20  ;;  %v4409_v20 = vld [vmem:[#allocation4 + $0x768] ss:$16 sps:$4 sm:$0xff]  }
 0x1a0   : > { %2546 = vmatpush2.bf16.msra.mxu1 %v4325_v21  ;;  %2506 = vmatprep.subr.bf16.mxu0 %v4330_v22  ;;  %v4414_v21 = vld [vmem:[#allocation4 + $0x54c] ss:$16 sps:$4 sm:$0xff]  }
 0x1a1   : > { %2547 = vmatprep.subr.bf16.mxu1 %v4333_v23  ;;  %v4417_v22 = vld [vmem:[#allocation4 + $0x74c] ss:$16 sps:$4 sm:$0xff]   ;;  %v4412_v23 = vld [vmem:[#allocation4 + $0x548] ss:$16 sps:$4 sm:$0xff]  }
 0x1a3   : > { %2507 = vmatpush2.bf16.msra.mxu0 %v4328_v24  ;;  %v4415_v24 = vld [vmem:[#allocation4 + $0x748] ss:$16 sps:$4 sm:$0xff]  }
 0x1a4   : > { %2548 = vmatpush2.bf16.msra.mxu1 %v4331_v25  ;;  %2558 = vmatprep.subr.bf16.mxu0 %v4336_v26  ;;  %v4420_v25 = vld [vmem:[#allocation4 + $0x52c] ss:$16 sps:$4 sm:$0xff]  }
 0x1a5   : > { %2599 = vmatprep.subr.bf16.mxu1 %v4339_v27  ;;  %v4423_v26 = vld [vmem:[#allocation4 + $0x72c] ss:$16 sps:$4 sm:$0xff]   ;;  %v4418_v27 = vld [vmem:[#allocation4 + $0x528] ss:$16 sps:$4 sm:$0xff]  }
 0x1a6   : > { %2509 = vmatmul.mubr.bf16.vlgmr.msra.gmra.mxu0 %v4859_v35  ;;  %v4349_v35 = vld [vmem:[#allocation4 + $0x6a8] ss:$16 sps:$4 sm:$0xff]  }
 0x1a7   : > { %2550 = vmatmul.mubr.bf16.vlgmr.msra.gmra.mxu1 %v4855_v31  ;;  %2559 = vmatpush1.bf16.msra.mxu0 %v4334_v28  ;;  %v4357_v31 = vld [vmem:[#allocation4 + $0x68c] ss:$16 sps:$4 sm:$0xff]   ;;  %v4421_v28 = vld [vmem:[#allocation4 + $0x728] ss:$16 sps:$4 sm:$0xff]  }
 0x1a8   : > { %2590 = vmatprep.mubr.bf16.mxu0 %v4875_v5  ;;  %2600 = vmatpush1.bf16.msra.mxu1 %v4337_v29  ;;  %v4355_v5 = vld [vmem:[#allocation4 + $0x688] ss:$16 sps:$4 sm:$0xff]   ;;  %v4426_v29 = vld [vmem:[#allocation4 + $0x50c] ss:$16 sps:$4 sm:$0xff]  }
 0x1a9   : > { %2631 = vmatprep.mubr.bf16.mxu1 %v4877_v14  ;;  %2560 = vmatprep.subr.bf16.mxu0 %v4342_v32  ;;  %v4358_v14 = vld [vmem:[#allocation4 + $0x468] ss:$16 sps:$4 sm:$0xff]   ;;  %v4429_v32 = vld [vmem:[#allocation4 + $0x70c] ss:$16 sps:$4 sm:$0xff]  }
 0x1aa   : > { %2601 = vmatprep.subr.bf16.mxu1 %v4345_v30  ;;  %v4424_v30 = vld [vmem:[#allocation4 + $0x508] ss:$16 sps:$4 sm:$0xff]  }
 0x1ab   : > { %2561 = vmatpush1.bf16.msra.mxu0 %v4340_v33  ;;  %v4427_v33 = vld [vmem:[#allocation4 + $0x708] ss:$16 sps:$4 sm:$0xff]  }
 0x1ac   : > { %2602 = vmatpush1.bf16.msra.mxu1 %v4343_v36  ;;  %2562 = vmatprep.subr.bf16.mxu0 %v4348_v34  ;;  %v4432_v36 = vld [vmem:[#allocation6 + $0x74] ss:$8 sps:$4 sm:$0xff]   ;;  %v4430_v34 = vld [vmem:[#allocation6 + $0x70] ss:$8 sps:$4 sm:$0xff]  }
 0x1ad   : > { %2603 = vmatprep.subr.bf16.mxu1 %v4351_v37  ;;  %v4435_v37 = vld [vmem:[#allocation6 + $0x64] ss:$8 sps:$4 sm:$0xff]  }
 0x1af   : > { %2563 = vmatpush1.bf16.msra.mxu0 %v4346_v38 }
 0x1b0   : > { %2604 = vmatpush1.bf16.msra.mxu1 %v4349_v35  ;;  %2564 = vmatprep.subr.bf16.mxu0 %v4354_v39  ;;  %v4433_v39 = vld [vmem:[#allocation6 + $0x60] ss:$8 sps:$4 sm:$0xff]  }
 0x1b1   : > { %2605 = vmatprep.subr.bf16.mxu1 %v4357_v31 }
 0x1b3   : > { %2565 = vmatpush1.bf16.msra.mxu0 %v4352_v40  ;;  %v4438_v40 = vld [vmem:[#allocation6 + $0x54] ss:$8 sps:$4 sm:$0xff]  }
 0x1b4   : > { %2606 = vmatpush1.bf16.msra.mxu1 %v4355_v5  ;;  %2566 = vmatprep.subr.bf16.mxu0 %v4360_v41 }
 0x1b5   : > { %2607 = vmatprep.subr.bf16.mxu1 %v4363_v42 }
 0x1b7   : > { %2567 = vmatpush1.bf16.msra.mxu0 %v4358_v14  ;;  %v4436_v14 = vld [vmem:[#allocation6 + $0x50] ss:$8 sps:$4 sm:$0xff]  }
 0x1b8   : > { %2608 = vmatpush1.bf16.msra.mxu1 %v4361_v43  ;;  %2568 = vmatprep.subr.bf16.mxu0 %v4366_v44 }
 0x1b9   : > { %2609 = vmatprep.subr.bf16.mxu1 %v4369_v45  ;;  %v4478_v45 = vld [vmem:[#allocation6 + $0x170] ss:$8 sps:$4 sm:$0xff]  }
 0x1bb   : > { %2569 = vmatpush1.bf16.msra.mxu0 %v4364_v46  ;;  %v4483_v46 = vld [vmem:[#allocation6 + $0x164] ss:$8 sps:$4 sm:$0xff]  }
 0x1bc   : > { %2610 = vmatpush1.bf16.msra.mxu1 %v4367_v47  ;;  %2570 = vmatprep.subr.bf16.mxu0 %v4372_v48  ;;  %v4439_v47 = vld [vmem:[#allocation6 + $0x40] ss:$8 sps:$4 sm:$0xff]   ;;  %v4444_v48 = vld [vmem:[#allocation6 + $0x34] ss:$8 sps:$4 sm:$0xff]  }
 0x1bd   : > { %2611 = vmatprep.subr.bf16.mxu1 %v4375_v49  ;;  %v4481_v49 = vld [vmem:[#allocation6 + $0x160] ss:$8 sps:$4 sm:$0xff]  }
 0x1bf   : > { %2571 = vmatpush1.bf16.msra.mxu0 %v4370_v51  ;;  %v4486_v51 = vld [vmem:[#allocation6 + $0x154] ss:$8 sps:$4 sm:$0xff]  }
 0x1c0   : > { %2612 = vmatpush1.bf16.msra.mxu1 %v4373_v52  ;;  %2572 = vmatprep.subr.bf16.mxu0 %v4378_v54  ;;  %v4442_v52 = vld [vmem:[#allocation6 + $0x30] ss:$8 sps:$4 sm:$0xff]   ;;  %v4447_v54 = vld [vmem:[#allocation6 + $0x24] ss:$8 sps:$4 sm:$0xff]  }
 0x1c1   : > { %2613 = vmatprep.subr.bf16.mxu1 %v4381_v55  ;;  %v4484_v55 = vld [vmem:[#allocation6 + $0x150] ss:$8 sps:$4 sm:$0xff]  }
 0x1c3   : > { %2573 = vmatpush1.bf16.msra.mxu0 %v4376_v56  ;;  %v4489_v56 = vld [vmem:[#allocation6 + $0x144] ss:$8 sps:$4 sm:$0xff]  }
 0x1c4   : > { %2614 = vmatpush1.bf16.msra.mxu1 %v4379_v57  ;;  %2574 = vmatprep.subr.bf16.mxu0 %v4384_v58  ;;  %v4445_v57 = vld [vmem:[#allocation6 + $0x20] ss:$8 sps:$4 sm:$0xff]   ;;  %v4450_v58 = vld [vmem:[#allocation6 + $0x14] ss:$8 sps:$4 sm:$0xff]  }
 0x1c5   : > { %2615 = vmatprep.subr.bf16.mxu1 %v4387_v59  ;;  %v4487_v59 = vld [vmem:[#allocation6 + $0x140] ss:$8 sps:$4 sm:$0xff]  }
 0x1c7   : > { %2575 = vmatpush2.bf16.msra.mxu0 %v4382_v60  ;;  %v4492_v60 = vld [vmem:[#allocation6 + $0x134] ss:$8 sps:$4 sm:$0xff]  }
 0x1c8   : > { %2616 = vmatpush2.bf16.msra.mxu1 %v4385_v61  ;;  %2576 = vmatprep.subr.bf16.mxu0 %v4390_v62  ;;  %v4448_v61 = vld [vmem:[#allocation6 + $0x10] ss:$8 sps:$4 sm:$0xff]   ;;  %v4453_v62 = vld [vmem:[#allocation6 + $0x4] ss:$8 sps:$4 sm:$0xff]  }
 0x1c9   : > { %2617 = vmatprep.subr.bf16.mxu1 %v4393_v63  ;;  %v4490_v63 = vld [vmem:[#allocation6 + $0x130] ss:$8 sps:$4 sm:$0xff]  }
 0x1cb   : > { %2577 = vmatpush2.bf16.msra.mxu0 %v4388_v1  ;;  %v4495_v1 = vld [vmem:[#allocation6 + $0x124] ss:$8 sps:$4 sm:$0xff]  }
 0x1cc   : > { %2618 = vmatpush2.bf16.msra.mxu1 %v4391_v2  ;;  %2578 = vmatprep.subr.bf16.mxu0 %v4396_v3  ;;  %v4451_v2 = vld [vmem:[#allocation6] ss:$8 sps:$4 sm:$0xff]   ;;  %v4456_v3 = vld [vmem:[#allocation6 + $0xf4] ss:$8 sps:$4 sm:$0xff]  }
 0x1cd   : > { %2619 = vmatprep.subr.bf16.mxu1 %v4399_v4  ;;  %v4493_v4 = vld [vmem:[#allocation6 + $0x120] ss:$8 sps:$4 sm:$0xff]  }
 0x1cf   : > { %2579 = vmatpush2.bf16.msra.mxu0 %v4394_v6  ;;  %v4498_v6 = vld [vmem:[#allocation6 + $0x114] ss:$8 sps:$4 sm:$0xff]  }
 0x1d0   : > { %2620 = vmatpush2.bf16.msra.mxu1 %v4397_v8  ;;  %2580 = vmatprep.subr.bf16.mxu0 %v4402_v12  ;;  %v4454_v8 = vld [vmem:[#allocation6 + $0xf0] ss:$8 sps:$4 sm:$0xff]   ;;  %v4459_v12 = vld [vmem:[#allocation6 + $0xe4] ss:$8 sps:$4 sm:$0xff]  }
 0x1d1   : > { %2621 = vmatprep.subr.bf16.mxu1 %v4405_v13  ;;  %v4496_v13 = vld [vmem:[#allocation6 + $0x110] ss:$8 sps:$4 sm:$0xff]  }
 0x1d3   : > { %2581 = vmatpush2.bf16.msra.mxu0 %v4400_v15  ;;  %v4501_v15 = vld [vmem:[#allocation6 + $0x104] ss:$8 sps:$4 sm:$0xff]  }
 0x1d4   : > { %2622 = vmatpush2.bf16.msra.mxu1 %v4403_v53  ;;  %2582 = vmatprep.subr.bf16.mxu0 %v4408_v50  ;;  %v4457_v53 = vld [vmem:[#allocation6 + $0xe0] ss:$8 sps:$4 sm:$0xff]   ;;  %v4462_v50 = vld [vmem:[#allocation6 + $0xd4] ss:$8 sps:$4 sm:$0xff]  }
 0x1d5   : > { %2623 = vmatprep.subr.bf16.mxu1 %v4411_v18  ;;  %v4499_v18 = vld [vmem:[#allocation6 + $0x100] ss:$8 sps:$4 sm:$0xff]  }
 0x1d7   : > { %2583 = vmatpush2.bf16.msra.mxu0 %v4406_v19  ;;  %v4504_v19 = vld [vmem:[#allocation6 + $0x1f4] ss:$8 sps:$4 sm:$0xff]  }
 0x1d8   : > { %2624 = vmatpush2.bf16.msra.mxu1 %v4409_v20  ;;  %2584 = vmatprep.subr.bf16.mxu0 %v4414_v21  ;;  %v4460_v20 = vld [vmem:[#allocation6 + $0xd0] ss:$8 sps:$4 sm:$0xff]   ;;  %v4465_v21 = vld [vmem:[#allocation6 + $0xc4] ss:$8 sps:$4 sm:$0xff]  }
 0x1d9   : > { %2625 = vmatprep.subr.bf16.mxu1 %v4417_v22  ;;  %v4502_v22 = vld [vmem:[#allocation6 + $0x1f0] ss:$8 sps:$4 sm:$0xff]  }
 0x1db   : > { %2585 = vmatpush2.bf16.msra.mxu0 %v4412_v23  ;;  %v4507_v23 = vld [vmem:[#allocation6 + $0x1e4] ss:$8 sps:$4 sm:$0xff]  }
 0x1dc   : > { %2626 = vmatpush2.bf16.msra.mxu1 %v4415_v24  ;;  %2586 = vmatprep.subr.bf16.mxu0 %v4420_v25  ;;  %v4463_v24 = vld [vmem:[#allocation6 + $0xc0] ss:$8 sps:$4 sm:$0xff]   ;;  %v4468_v25 = vld [vmem:[#allocation6 + $0xb4] ss:$8 sps:$4 sm:$0xff]  }
 0x1dd   : > { %2627 = vmatprep.subr.bf16.mxu1 %v4423_v26  ;;  %v4505_v26 = vld [vmem:[#allocation6 + $0x1e0] ss:$8 sps:$4 sm:$0xff]  }
 0x1df   : > { %2587 = vmatpush2.bf16.msra.mxu0 %v4418_v27  ;;  %v4510_v27 = vld [vmem:[#allocation6 + $0x1d4] ss:$8 sps:$4 sm:$0xff]  }
 0x1e0   : > { %2628 = vmatpush2.bf16.msra.mxu1 %v4421_v28  ;;  %2588 = vmatprep.subr.bf16.mxu0 %v4426_v29  ;;  %v4466_v28 = vld [vmem:[#allocation6 + $0xb0] ss:$8 sps:$4 sm:$0xff]   ;;  %v4471_v29 = vld [vmem:[#allocation6 + $0xa4] ss:$8 sps:$4 sm:$0xff]  }
 0x1e1   : > { %2629 = vmatprep.subr.bf16.mxu1 %v4429_v32  ;;  %v4508_v32 = vld [vmem:[#allocation6 + $0x1d0] ss:$8 sps:$4 sm:$0xff]  }
 0x1e3   : > { %2589 = vmatpush2.bf16.msra.mxu0 %v4424_v30  ;;  %v4513_v30 = vld [vmem:[#allocation6 + $0x1c4] ss:$8 sps:$4 sm:$0xff]  }
 0x1e4   : > { %2630 = vmatpush2.bf16.msra.mxu1 %v4427_v33  ;;  %3044 = vmatprep.subr.bf16.mxu0 %v4432_v36  ;;  %v4469_v33 = vld [vmem:[#allocation6 + $0xa0] ss:$8 sps:$4 sm:$0xff]   ;;  %v4474_v36 = vld [vmem:[#allocation6 + $0x94] ss:$8 sps:$4 sm:$0xff]  }
 0x1e6   : > { %2591 = vmatmul.mubr.bf16.vlgmr.msra.gmra.mxu0 %v4889_v17  ;;  %v4900_v38 = vpop.f32.mrf.mxu0  ;;  %v4903_v35 = vpop.f32.mrf.mxu1  ;;  %v4441_v17 = vld [vmem:[#allocation6 + $0x44] ss:$8 sps:$4 sm:$0xff]  }
 0x1e7   : > { %2632 = vmatmul.mubr.bf16.vlgmr.msra.gmra.mxu1 %v4887_v16  ;;  %3045 = vmatpush1.bf16.msra.mxu0 %v4430_v34  ;;  %v4480_v16 = vld [vmem:[#allocation6 + $0x174] ss:$8 sps:$4 sm:$0xff]   ;;  %v4511_v34 = vld [vmem:[#allocation6 + $0x1c0] ss:$8 sps:$4 sm:$0xff]  }
 0x1e8   : > { %v4905_v31 = vpop.f32.mrf.mxu0  ;;  %3046 = vmatprep.subr.bf16.mxu0 %v4435_v37  ;;  %v4907_v5 = vpop.f32.mrf.mxu1  ;;  %3085 = vmatprep.subr.bf16.mxu1 %v4480_v16  ;;  %v4516_v37 = vld [vmem:[#allocation6 + $0x1b4] ss:$8 sps:$4 sm:$0xff]  }
 0x1e9   : > { %3086 = vmatpush1.bf16.msra.mxu1 %v4478_v45 }
 0x1ea   : > { %v2350_v41 = vpop.f32.mrf.mxu0  ;;  %v2391_v42 = vpop.f32.mrf.mxu1  ;;  %3087 = vmatprep.subr.bf16.mxu1 %v4483_v46 }
 0x1eb   : > { %3047 = vmatpush1.bf16.msra.mxu0 %v4433_v39  ;;  %v4912_v39 = vld [vmem:[%s4984_s6 + $0x8] sm:$0xf]  ;;  %v4477_v41 = vld [vmem:[#allocation6 + $0x84] ss:$8 sps:$4 sm:$0xff]   ;;  %v4514_v42 = vld [vmem:[#allocation6 + $0x1b0] ss:$8 sps:$4 sm:$0xff]  }
 0x1ec   : > { %v2351_v43 = vpop.f32.mrf.mxu0  ;;  %3048 = vmatprep.subr.bf16.mxu0 %v4438_v40  ;;  %v2392_v44 = vpop.f32.mrf.mxu1  ;;  %v4472_v40 = vld [vmem:[#allocation6 + $0x90] ss:$8 sps:$4 sm:$0xff]  }
 0x1ed   : > { %3088 = vmatpush1.bf16.msra.mxu1 %v4481_v49  ;;  %v1019_v43 = vrot.slane %v4912_v39, %v4842_v10 }
 0x1ee   : > { %3089 = vmatprep.subr.bf16.mxu1 %v4486_v51 }
 0x1ef   : > { %3049 = vmatpush1.bf16.msra.mxu0 %v4436_v14  ;;  %v1015_v14 = vrot.slane %v4912_v39, %v4833_v7  ;;  %v2349_v45 = vadd.f32 %v4905_v31, %v1019_v43 }
 0x1f0   : > { %3050 = vmatprep.subr.bf16.mxu0 %v4441_v17  ;;  %v4475_v17 = vld [vmem:[#allocation6 + $0x80] ss:$8 sps:$4 sm:$0xff]  }
 0x1f1   : > { %3090 = vmatpush1.bf16.msra.mxu1 %v4484_v55  ;;  %v2347_v44 = vadd.f32 %v4900_v38, %v1015_v14  ;;  %v4522_v38 = vld [vmem:[#allocation6 + $0x194] ss:$8 sps:$4 sm:$0xff]  }
 0x1f2   : > { %3091 = vmatprep.subr.bf16.mxu1 %v4489_v56 }
 0x1f3   : > { %3051 = vmatpush1.bf16.msra.mxu0 %v4439_v47  ;;  %v2388_v16 = vadd.f32 %v4903_v35, %v2347_v44  ;;  %v4519_v47 = vld [vmem:[#allocation6 + $0x1a4] ss:$8 sps:$4 sm:$0xff]  }
 0x1f4   : > { %3052 = vmatprep.subr.bf16.mxu0 %v4444_v48  ;;  %v2390_v48 = vadd.f32 %v4907_v5, %v2349_v45  ;;  %v4525_v5 = vld [vmem:[#allocation6 + $0x184] ss:$8 sps:$4 sm:$0xff]  }
 0x1f5   : > { %3092 = vmatpush1.bf16.msra.mxu1 %v4487_v59 }
 0x1f6   : > { %3093 = vmatprep.subr.bf16.mxu1 %v4492_v60  ;;  %v4520_v60 = vld [vmem:[#allocation6 + $0x190] ss:$8 sps:$4 sm:$0xff]  }
 0x1f7   : > { %3053 = vmatpush1.bf16.msra.mxu0 %v4442_v52  ;;  %v4517_v52 = vld [vmem:[#allocation6 + $0x1a0] ss:$8 sps:$4 sm:$0xff]  }
 0x1f8   : > { %3054 = vmatprep.subr.bf16.mxu0 %v4447_v54 }
 0x1f9   : > { %3094 = vmatpush1.bf16.msra.mxu1 %v4490_v63 }
 0x1fa   : > { %3095 = vmatprep.subr.bf16.mxu1 %v4495_v1 }
 0x1fb   : > { %3055 = vmatpush1.bf16.msra.mxu0 %v4445_v57 }
 0x1fc   : > { %3056 = vmatprep.subr.bf16.mxu0 %v4450_v58 }
 0x1fd   : > { %3096 = vmatpush1.bf16.msra.mxu1 %v4493_v4 }
 0x1fe   : > { %3097 = vmatprep.subr.bf16.mxu1 %v4498_v6 }
 0x1ff   : > { %3057 = vmatpush1.bf16.msra.mxu0 %v4448_v61 }
 0x200   : > { %3058 = vmatprep.subr.bf16.mxu0 %v4453_v62 }
 0x201   : > { %3098 = vmatpush1.bf16.msra.mxu1 %v4496_v13 }
 0x202   : > { %3099 = vmatprep.subr.bf16.mxu1 %v4501_v15 }
 0x203   : > { %3059 = vmatpush1.bf16.msra.mxu0 %v4451_v2  ;;  %v4523_v2 = vld [vmem:[#allocation6 + $0x180] ss:$8 sps:$4 sm:$0xff]  }
 0x204   : > { %3060 = vmatprep.subr.bf16.mxu0 %v4456_v3 }
 0x205   : > { %3100 = vmatpush1.bf16.msra.mxu1 %v4499_v18  ;;  %v4526_v18 = vld [vmem:[#allocation7 + $0x78] sm:$0xff]  }
 0x206   : > { %3101 = vmatprep.subr.bf16.mxu1 %v4504_v19  ;;  %v4527_v19 = vld [vmem:[#allocation7 + $0x38] sm:$0xff]  }
 0x207   : > { %3061 = vmatpush2.bf16.msra.mxu0 %v4454_v8 }
 0x208   : > { %3062 = vmatprep.subr.bf16.mxu0 %v4459_v12 }
 0x209   : > { %3102 = vmatpush2.bf16.msra.mxu1 %v4502_v22  ;;  %v4530_v22 = vld [vmem:[#allocation7 + $0x68] sm:$0xff]  }
 0x20a   : > { %3103 = vmatprep.subr.bf16.mxu1 %v4507_v23  ;;  %v4531_v23 = vld [vmem:[#allocation7 + $0x28] sm:$0xff]  }
 0x20b   : > { %3063 = vmatpush2.bf16.msra.mxu0 %v4457_v53 }
 0x20c   : > { %3064 = vmatprep.subr.bf16.mxu0 %v4462_v50 }
 0x20d   : > { %3104 = vmatpush2.bf16.msra.mxu1 %v4505_v26  ;;  %v4534_v26 = vld [vmem:[#allocation7 + $0x58] sm:$0xff]  }
 0x20e   : > { %3105 = vmatprep.subr.bf16.mxu1 %v4510_v27  ;;  %v4535_v27 = vld [vmem:[#allocation7 + $0x18] sm:$0xff]  }
 0x20f   : > { %3065 = vmatpush2.bf16.msra.mxu0 %v4460_v20  ;;  %v4528_v20 = vld [vmem:[#allocation7 + $0x70] sm:$0xff]  }
 0x210   : > { %3066 = vmatprep.subr.bf16.mxu0 %v4465_v21  ;;  %v4529_v21 = vld [vmem:[#allocation7 + $0x30] sm:$0xff]  }
 0x211   : > { %3106 = vmatpush2.bf16.msra.mxu1 %v4508_v32  ;;  %v1023_v32 = vrot.slane %v4912_v39, %v380_v9 }
 0x212   : > { %3107 = vmatprep.subr.bf16.mxu1 %v4513_v30  ;;  %v1027_v30 = vrot.slane %v4912_v39, %v384_v11 }
 0x213   : > { %3067 = vmatpush2.bf16.msra.mxu0 %v4463_v24  ;;  %v4532_v24 = vld [vmem:[#allocation7 + $0x60] sm:$0xff]  }
 0x214   : > { %3068 = vmatprep.subr.bf16.mxu0 %v4468_v25  ;;  %v4533_v25 = vld [vmem:[#allocation7 + $0x20] sm:$0xff]  }
 0x215   : > { %3108 = vmatpush2.bf16.msra.mxu1 %v4511_v34 }
 0x216   : > { %3109 = vmatprep.subr.bf16.mxu1 %v4516_v37 }
 0x217   : > { %3069 = vmatpush2.bf16.msra.mxu0 %v4466_v28  ;;  %v4536_v28 = vld [vmem:[#allocation7 + $0x50] sm:$0xff]  }
 0x218   : > { %3070 = vmatprep.subr.bf16.mxu0 %v4471_v29  ;;  %v4537_v29 = vld [vmem:[#allocation7 + $0x10] sm:$0xff]  }
 0x219   : > { %3110 = vmatpush2.bf16.msra.mxu1 %v4514_v42 }
 0x21a   : > { %3111 = vmatprep.subr.bf16.mxu1 %v4519_v47 }
 0x21b   : > { %3071 = vmatpush2.bf16.msra.mxu0 %v4469_v33 }
 0x21c   : > { %3072 = vmatprep.subr.bf16.mxu0 %v4474_v36 }
 0x21d   : > { %3112 = vmatpush2.bf16.msra.mxu1 %v4517_v52  ;;  %v4538_v52 = vld [vmem:[#allocation7 + $0x48] sm:$0xff]  }
 0x21e   : > { %3113 = vmatprep.subr.bf16.mxu1 %v4522_v38  ;;  %v4542_v38 = vld [vmem:[%s4983_s5 + $0x38] sm:$0xff]  }
 0x21f   : > { %3073 = vmatpush2.bf16.msra.mxu0 %v4472_v40 }
 0x220   : > { %3074 = vmatprep.subr.bf16.mxu0 %v4477_v41 }
 0x221   : > { %3114 = vmatpush2.bf16.msra.mxu1 %v4520_v60  ;;  %v4544_v60 = vld [vmem:[%s4983_s5 + $0x28] sm:$0xff]  }
 0x222   : > { %3115 = vmatprep.subr.bf16.mxu1 %v4525_v5 }
 0x223   : > { %3075 = vmatpush2.bf16.msra.mxu0 %v4475_v17 }
 0x224   : > { %3935 = vmatprep.subr.bf16.mxu0 %v4526_v18 }
 0x225   : > { %3116 = vmatpush2.bf16.msra.mxu1 %v4523_v2 }
 0x226   : > { %v2428_v46 = vpop.f32.mrf.mxu0  ;;  %v2469_v51 = vpop.f32.mrf.mxu1 }
 0x227   : > { %v2429_v49 = vadd.f32 %v2428_v46, %v2388_v16 }
 0x228   : > { %v2430_v54 = vpop.f32.mrf.mxu0  ;;  %v2471_v57 = vpop.f32.mrf.mxu1 }
 0x229   : > { %v2470_v55 = vadd.f32 %v2469_v51, %v2429_v49  ;;  %v2431_v56 = vadd.f32 %v2430_v54, %v2390_v48  ;;  %v4539_v54 = vld [vmem:[#allocation7 + $0x8] sm:$0xff]  }
 0x22a   : > { %v2432_v58 = vpop.f32.mrf.mxu0  ;;  %v2473_v31 = vpop.f32.mrf.mxu1 }
 0x22b   : > { %v2472_v59 = vadd.f32 %v2471_v57, %v2431_v56  ;;  %v2640_v61 = vmax.f32 %v2470_v55, 0.0  ;;  %v4540_v57 = vld [vmem:[#allocation7 + $0x40] sm:$0xff]   ;;  %v4543_v31 = vld [vmem:[%s4983_s5 + $0x30] sm:$0xff]  }
 0x22c   : > { %v2433_v35 = vpop.f32.mrf.mxu0  ;;  %v2474_v63 = vpop.f32.mrf.mxu1  ;;  %v4541_v58 = vld [vmem:[#allocation7] sm:$0xff]  }
 0x22d   : > { %v2641_v62 = vmax.f32 %v2472_v59, 0.0  ;;  %v2709_v3 = vpack.c.bf16 %v2640_v61, %v2640_v61  ;;  %v4687_v59 = vmov 0.0   ;;  %v4545_v61 = vld [vmem:[%s4983_s5 + $0x20] sm:$0xff]   ;;  %v4546_v35 = vld [vmem:[%s4983_s5 + $0x18] sm:$0xff]  }
 0x22e   : > { %3966 = vmatprep.subr.bf16.mxu1 %v4687_v59 }
 0x22f   : > { %v2710_v1 = vpack.c.bf16 %v2641_v62, %v2641_v62  ;;  %v2708_v62 = vld [vmem:[%s4984_s6 + $0xc] sm:$0x3] }
 0x230   : > { %v2717_v63 = vrot.slane %v2708_v62, %v4833_v7  ;;  %v2721_v5 = vrot.slane %v2708_v62, %v4842_v10  ;;  %v4547_v7 = vld [vmem:[%s4983_s5 + $0x10] sm:$0xff]   ;;  %v4548_v10 = vld [vmem:[%s4983_s5 + $0x8] sm:$0xff]  }
 0x231   : > { %3076 = vmatprep.mubr.bf16.mxu0 %v2710_v1 }
 0x232   : > { %3077 = vmatmul.mubr.bf16.vlgmr.msra.gmra.mxu0 %v2709_v3 }
 0x233   : > { %3936 = vmatpush3.bf16.msra.mxu0 %v4527_v19  ;;  %v4549_v19 = vld [vmem:[%s4983_s5] sm:$0xff]  }
 0x234   : > { %3937 = vmatprep.subr.bf16.mxu0 %v4528_v20 }
 0x237   : > { %3938 = vmatpush3.bf16.msra.mxu0 %v4529_v21  ;;  %v3905_v21 = vld [vmem:[%s4984_s6 + $0xe] ss:$0 sm:$0xff] }
 0x238   : > { %3939 = vmatprep.subr.bf16.mxu0 %v4530_v22 }
 0x23b   : > { %3940 = vmatpush3.bf16.msra.mxu0 %v4531_v23 }
 0x23c   : > { %3941 = vmatprep.subr.bf16.mxu0 %v4532_v24 }
 0x23f   : > { %3942 = vmatpush3.bf16.msra.mxu0 %v4533_v25 }
 0x240   : > { %3943 = vmatprep.subr.bf16.mxu0 %v4534_v26 }
 0x243   : > { %3944 = vmatpush3.bf16.msra.mxu0 %v4535_v27 }
 0x244   : > { %3945 = vmatprep.subr.bf16.mxu0 %v4536_v28 }
 0x247   : > { %3946 = vmatpush3.bf16.msra.mxu0 %v4537_v29  ;;  %v3922_v29 = vld [vmem:[%s4984_s6 + $0xf] ss:$0 sm:$0xff] }
 0x248   : > { %3947 = vmatprep.subr.bf16.mxu0 %v4538_v52 }
 0x24b   : > { %3948 = vmatpush3.bf16.msra.mxu0 %v4539_v54 }
 0x24c   : > { %3949 = vmatprep.subr.bf16.mxu0 %v4540_v57 }
 0x24f   : > { %3950 = vmatpush3.bf16.msra.mxu0 %v4541_v58 }
 0x266   : > { %v2510_v4 = vpop.f32.mrf.mxu0 }
 0x267   : > { %v2551_v6 = vpop.f32.mrf.mxu1  ;;  %v2511_v33 = vadd.f32 %v2510_v4, %v1023_v32 }
 0x268   : > { %v2512_v8 = vpop.f32.mrf.mxu0 }
 0x269   : > { %v2553_v12 = vpop.f32.mrf.mxu1  ;;  %v2513_v36 = vadd.f32 %v2512_v8, %v1027_v30  ;;  %v2552_v34 = vadd.f32 %v2551_v6, %v2511_v33 }
 0x26a   : > { %v2514_v13 = vpop.f32.mrf.mxu0 }
 0x26b   : > { %v2555_v15 = vpop.f32.mrf.mxu1  ;;  %v2554_v40 = vadd.f32 %v2553_v12, %v2513_v36  ;;  %v3931_v36 = vld [vmem:[%s4984_s6 + $0x10] ss:$0 sm:$0xff] }
 0x26c   : > { %v2515_v53 = vpop.f32.mrf.mxu0 }
 0x26d   : > { %v2556_v50 = vpop.f32.mrf.mxu1 }
 0x2a6   : > { %v2592_v37 = vpop.f32.mrf.mxu0 }
 0x2a7   : > { %v2593_v41 = vadd.f32 %v2592_v37, %v2552_v34  ;;  %v2633_v42 = vpop.f32.mrf.mxu1 }
 0x2a8   : > { %v2594_v14 = vpop.f32.mrf.mxu0 }
 0x2a9   : > { %v2634_v43 = vadd.f32 %v2633_v42, %v2593_v41  ;;  %v2595_v17 = vadd.f32 %v2594_v14, %v2554_v40  ;;  %v2635_v44 = vpop.f32.mrf.mxu1  ;;  %v3932_v14 = vld [vmem:[%s4984_s6 + $0x11] ss:$0 sm:$0xff] }
 0x2aa   : > { %v2596_v45 = vpop.f32.mrf.mxu0 }
 0x2ab   : > { %v2636_v16 = vadd.f32 %v2635_v44, %v2595_v17  ;;  %v2637_v46 = vpop.f32.mrf.mxu1  ;;  %v2642_v47 = vmax.f32 %v2634_v43, 0.0 }
 0x2ac   : > { %v2597_v9 = vpop.f32.mrf.mxu0 }
 0x2ad   : > { %v2643_v48 = vmax.f32 %v2636_v16, 0.0  ;;  %v2638_v0 = vpop.f32.mrf.mxu1  ;;  %v2711_v11 = vpack.c.bf16 %v2642_v47, %v2642_v47 }
 0x2af   : > { %v2712_v49 = vpack.c.bf16 %v2643_v48, %v2643_v48 }
 0x2b1   : > { %3117 = vmatprep.mubr.bf16.mxu1 %v2712_v49 }
 0x2b2   : > { %3118 = vmatmul.mubr.bf16.vlgmr.msra.gmra.mxu1 %v2711_v11 }
 0x2b3   : > { %3967 = vmatpush3.bf16.msra.mxu1 %v4542_v38  ;;  %3982 = vmatprep.mubr.msk.bf16.mxu1 %vm4688_vm1, %v4687_v59 }
 0x2b4   : > { %3968 = vmatprep.subr.bf16.mxu1 %v4687_v59 }
 0x2b7   : > { %3969 = vmatpush3.bf16.msra.mxu1 %v4543_v31 }
 0x2b8   : > { %3970 = vmatprep.subr.bf16.mxu1 %v4687_v59 }
 0x2bb   : > { %3971 = vmatpush3.bf16.msra.mxu1 %v4544_v60 }
 0x2bc   : > { %3972 = vmatprep.subr.bf16.mxu1 %v4687_v59 }
 0x2bf   : > { %3973 = vmatpush3.bf16.msra.mxu1 %v4545_v61 }
 0x2c0   : > { %3974 = vmatprep.subr.bf16.mxu1 %v4687_v59 }
 0x2c3   : > { %3975 = vmatpush3.bf16.msra.mxu1 %v4546_v35 }
 0x2c4   : > { %3976 = vmatprep.subr.bf16.mxu1 %v4687_v59 }
 0x2c7   : > { %3977 = vmatpush3.bf16.msra.mxu1 %v4547_v7 }
 0x2c8   : > { %3978 = vmatprep.subr.bf16.mxu1 %v4687_v59 }
 0x2cb   : > { %3979 = vmatpush3.bf16.msra.mxu1 %v4548_v10 }
 0x2cc   : > { %3980 = vmatprep.subr.bf16.mxu1 %v4687_v59 }
 0x2cf   : > { %3981 = vmatpush3.bf16.msra.mxu1 %v4549_v19 }
 0x2f2   : > { %v3078_v39 = vpop.f32.mrf.mxu0 }
 0x2f3   : > { %v3079_v1 = vadd.f32 %v3078_v39, %v2717_v63 }
 0x2f4   : > { %v3080_v51 = vpop.f32.mrf.mxu0 }
 0x2f5   : > { %v3081_v3 = vadd.f32 %v3080_v51, %v2721_v5 }
 0x2f6   : > { %v3082_v55 = vpop.f32.mrf.mxu0 }
 0x2f8   : > { %v3083_v56 = vpop.f32.mrf.mxu0 }
 0x372   : > { %v3119_v2 = vpop.f32.mrf.mxu1 }
 0x373   : > { %v3120_v4 = vadd.f32 %v3119_v2, %v3079_v1 }
 0x374   : > { %v3121_v6 = vpop.f32.mrf.mxu1 }
 0x375   : > { %v3122_v8 = vadd.f32 %v3121_v6, %v3081_v3  ;;  %v3126_v12 = vmax.f32 %v3120_v4, 0.0 }
 0x376   : > { %v3123_v13 = vpop.f32.mrf.mxu1 }
 0x377   : > { %v3127_v15 = vmax.f32 %v3122_v8, 0.0  ;;  %v3161_v18 = vpack.c.bf16 %v3126_v12, %v3126_v12 }
 0x378   : > { %v3124_v53 = vpop.f32.mrf.mxu1 }
 0x379   : > { %v3162_v50 = vpack.c.bf16 %v3127_v15, %v3127_v15 }
 0x37b   : > { %3297 = vmatprep.mubr.bf16.mxu0 %v3162_v50 }
 0x37c   : > { %3298 = vmatmul.mubr.bf16.vlgmr.msra.gmra.mxu0 %v3161_v18 }
 0x43c   : > { %v3951_v20 = vpop.f32.mrf.mxu0 }
 0x43e   : > { %v3952_v22 = vpop.f32.mrf.mxu0 }
 0x43f   : > { %v3953_v23 = vadd.f32 %v3952_v22, %v3951_v20 }
 0x440   : > { %v3954_v24 = vpop.f32.mrf.mxu0 }
 0x441   : > { %v3300_v25 = vadd.f32 %v3953_v23, %v3905_v21 }
 0x442   : > { %v3955_v26 = vpop.f32.mrf.mxu0 }
 0x443   : > { %v3305_v27 = vmax.f32 %v3300_v25, 0.0 }
 0x445   : > { %v3323_v28 = vpack.c.bf16 %v3305_v27, %v3305_v27 }
 0x447   : > { %3983 = vmatmul.mubr.bf16.vlgmr.msra.gmra.mxu1 %v3323_v28 }
 0x507   : > { %v3412_v32 = vpop.f32.mrf.mxu1 }
 0x508   : > { %v3413_v30 = vadd.f32 %v3922_v29, %v3412_v32 }
 0x509   : > { %v3984_v33 = vpop.f32.mrf.mxu1 }
 0x50a   : > { %v3418_v34 = vmax.f32 %v3413_v30, 0.0 }
 0x50b   : > { %v3415_v37 = vpop.f32.mrf.mxu1 }
 0x50c   : > { %v3427_v40 = vmul.f32 %v3931_v36, %v3418_v34 }
 0x50d   : > { %v3985_v41 = vpop.f32.mrf.mxu1 }
 0x50e   : > { %v3428_v42 = vsel %vm570_vm0, %v3427_v40, 0.0 }
 0x50f   : > { %3429 = vadd.xlane.f32.xlu0 %v3428_v42 }
 0x598   : > { %v3430_v43 = vpop.xlane.xlu0 %3429 }
 0x599   : > { %v3437_v17 = vadd.f32 %v3932_v14, %v3430_v43 }
 0x59b   : > { %3439 = vst.msk [vmem:[%s332_s9] sm:$0xff] %vm3438_vm2, %v3437_v17 }
 0x59c PF: > { %s20_s24 = sadd.s32 1, %s4672_s24  }
 0x59d   : > { %p17_p2 = scmp.ge.s32.totalorder %s20_s24, 4  }
 0x59f   :  { %19 = sbr.rel (!%p17_p2) target bundleno = 3 (0x3), region = 95 }
 0x5a4   :  { %3459 = vsyncpa [#allocation3], 1 }
 0x5a5   :  { %3461 = vsyncpa [#allocation3 + $0x1], 1 }
 0x5a6   :  { %3462 = vsyncpa [#allocation5], 1 }
 0x5a7   :  { %3463 = vsyncpa [#allocation8], 1 }

</bundles_post_ra>
